<compile_context>
chip_gen: v6e
topology: v6e:2x2x1
jax: 0.10.0
libtpu: 0.0.40
codegen_flags: <defaults>
</compile_context>

<pallas_src>
import functools

import jax
import jax.numpy as jnp
from jax import lax
from jax.experimental import pallas as pl
from jax.experimental.pallas import tpu as pltpu

BN_EPS = 1e-5

# Explicit scoped-VMEM request: v5e's default is 16 MiB, v6e/v7x 32 MiB; 32 MiB is
# well under every generation's physical VMEM (128/128/64 MiB).
_VMEM_LIMIT_BYTES = 32 * 1024 * 1024


def _pick_row_tile(h, width, cin, cmid, cout, act_bytes,
                   vmem_budget=_VMEM_LIMIT_BYTES // 2):
    """Largest row tile (multiple of 8, divides H) whose double-buffered working
    set fits the VMEM budget.  Counts lane padding to 128; the other half of the
    scoped limit is left for the weight bands, halos, stats and Mosaic scratch.
    (For v7x megacore balance, keep N * (H/ht) >= 2 -- batch >= 2 already does.)
    """
    lanes = lambda c: ((width * c + 127) // 128) * 128
    # Heavier conv pass: 2x double-buffered center input + 2x raw output + f32 acc.
    row_bytes = (2 * lanes(max(cin, cmid)) * act_bytes
                 + 2 * lanes(max(cmid, cout)) * act_bytes
                 + lanes(max(cmid, cout)) * 4)
    max_rows = max(8, (vmem_budget // row_bytes) // 8 * 8)
    best = 8
    t = 8
    while t <= min(h, max_rows):
        if h % t == 0:
            best = t
        t += 8
    return best


def _band_weights(w_oihw, width, dtype):
    """Fold the 3 dx taps and the conv's zero padding along W into one banded
    (W*Cin, W*Cout) matrix per dy, so the kernel's matmul contracts over W*Cin.

    band[dy][src*Cin + i, x*Cout + o] = w[dy, dx, i, o]  where src = x + dx - 1
    (out-of-range src simply omitted == zero padding along W).
    """
    w = jnp.transpose(w_oihw, (2, 3, 1, 0)).astype(jnp.float32)   # (3,3,Cin,Cout)
    mats = []
    for dy in range(3):
        m = 0.0
        for dx in range(3):
            shift = jnp.eye(width, k=1 - dx, dtype=jnp.float32)   # src == x+dx-1
            m = m + jnp.kron(shift, w[dy, dx])
        mats.append(m)
    return jnp.stack(mats).astype(dtype)          # (3, W*Cin, W*Cout)


def _conv_bn_stats_kernel(*refs, ht, apply_input_act):
    """One (batch, row-tile) grid step: 3x3 'same' conv as 3 banded matmuls plus
    per-tile (sum, sum^2) partials of the raw f32 conv output.

    If apply_input_act, the previous layer's fused BatchNorm scale/shift + ReLU is
    applied to the loaded rows first (row/W zero padding stays exactly zero because
    border contributions are skipped / folded out of the weight band)."""
    if apply_input_act:
        (scale_ref, shift_ref, top_ref, mid_ref, bot_ref, w_ref,
         y_ref, sum_ref, ssq_ref, acc_ref) = refs
    else:
        (top_ref, mid_ref, bot_ref, w_ref,
         y_ref, sum_ref, ssq_ref, acc_ref) = refs
        scale_ref = shift_ref = None

    i = pl.program_id(1)
    last = pl.num_programs(1) - 1
    cdt = w_ref.dtype                       # MXU operand dtype (bf16 or f32)

    def act(v):
        if apply_input_act:
            v = jnp.maximum(v.astype(jnp.float32) * scale_ref[...]
                            + shift_ref[...], 0.0)
        return v.astype(cdt)

    mid = act(mid_ref[0])                   # (ht, W*Cin), lane-dense
    w0, w1, w2 = w_ref[0], w_ref[1], w_ref[2]

    # dy = 1 tap: every output row uses its own input row.
    acc_ref[...] = jnp.dot(mid, w1, preferred_element_type=jnp.float32)
    # dy = 0 tap: output rows 1..ht-1 use the row above (still inside the tile).
    acc_ref[1:ht] += jnp.dot(mid[0:ht - 1], w0,
                             preferred_element_type=jnp.float32)
    # dy = 2 tap: output rows 0..ht-2 use the row below.
    acc_ref[0:ht - 1] += jnp.dot(mid[1:ht], w2,
                                 preferred_element_type=jnp.float32)

    # Row halos only at interior tile seams; at image borders we simply skip the
    # contribution, which is exactly the conv's zero padding (no masks needed).
    @pl.when(i > 0)
    def _():
        acc_ref[0:1] += jnp.dot(act(top_ref[0, 7:8]), w0,
                                preferred_element_type=jnp.float32)

    @pl.when(i < last)
    def _():
        acc_ref[ht - 1:ht] += jnp.dot(act(bot_ref[0, 0:1]), w2,
                                      preferred_element_type=jnp.float32)

    # BatchNorm partial statistics straight off the f32 accumulator; the
    # per-channel fold of the W*C lane axis happens in tiny XLA glue outside.
    acc = acc_ref[...]
    sum_ref[0, 0] = jnp.sum(acc, axis=0, keepdims=True)
    ssq_ref[0, 0] = jnp.sum(acc * acc, axis=0, keepdims=True)

    # Raw conv output, stored lane-dense (full-width unmasked store).
    y_ref[0] = acc.astype(y_ref.dtype)


def _bn_relu_kernel(scale_ref, shift_ref, y_ref, o_ref):
    y = y_ref[0].astype(jnp.float32)
    o_ref[0] = jnp.maximum(y * scale_ref[...] + shift_ref[...], 0.0
                           ).astype(o_ref.dtype)


def _conv_bn_stats(x, w_band, scale, shift, *, ht, apply_input_act, out_dtype):
    """One conv + BN-stat pass over a (N, H/ht) grid (both axes 'parallel')."""
    n, h, wc_in = x.shape
    wc_out = w_band.shape[-1]
    assert h % ht == 0 and ht % 8 == 0
    nh = h // ht
    hb = ht // 8                      # halo blocks are 8 rows (keeps (8,128) tiling)
    nhb = h // 8

    mid_spec = pl.BlockSpec((1, ht, wc_in), lambda b, i: (b, i, 0))
    top_spec = pl.BlockSpec((1, 8, wc_in),
                            lambda b, i: (b, jnp.maximum(i * hb - 1, 0), 0))
    bot_spec = pl.BlockSpec((1, 8, wc_in),
                            lambda b, i: (b, jnp.minimum((i + 1) * hb, nhb - 1), 0))
    w_spec = pl.BlockSpec((3, wc_in, wc_out), lambda b, i: (0, 0, 0))
    vec_spec = pl.BlockSpec((1, wc_in), lambda b, i: (0, 0))

    in_specs = [top_spec, mid_spec, bot_spec, w_spec]
    args = [x, x, x, w_band]
    if apply_input_act:
        in_specs = [vec_spec, vec_spec] + in_specs
        args = [scale, shift] + args

    kernel = functools.partial(_conv_bn_stats_kernel, ht=ht,
                               apply_input_act=apply_input_act)
    y, sums, ssqs = pl.pallas_call(
        kernel,
        grid=(n, nh),
        in_specs=in_specs,
        out_specs=(pl.BlockSpec((1, ht, wc_out), lambda b, i: (b, i, 0)),
                   pl.BlockSpec((1, 1, 1, wc_out), lambda b, i: (b, i, 0, 0)),
                   pl.BlockSpec((1, 1, 1, wc_out), lambda b, i: (b, i, 0, 0))),
        out_shape=(jax.ShapeDtypeStruct((n, h, wc_out), out_dtype),
                   jax.ShapeDtypeStruct((n, nh, 1, wc_out), jnp.float32),
                   jax.ShapeDtypeStruct((n, nh, 1, wc_out), jnp.float32)),
        scratch_shapes=[pltpu.VMEM((ht, wc_out), jnp.float32)],
        compiler_params=pltpu.CompilerParams(
            dimension_semantics=("parallel", "parallel"),
            vmem_limit_bytes=_VMEM_LIMIT_BYTES),
    )(*args)
    return y, sums, ssqs


def _bn_relu(y, scale, shift, *, ht, out_dtype):
    n, h, wc = y.shape
    nh = h // ht
    return pl.pallas_call(
        _bn_relu_kernel,
        grid=(n, nh),
        in_specs=[pl.BlockSpec((1, wc), lambda b, i: (0, 0)),
                  pl.BlockSpec((1, wc), lambda b, i: (0, 0)),
                  pl.BlockSpec((1, ht, wc), lambda b, i: (b, i, 0))],
        out_specs=pl.BlockSpec((1, ht, wc), lambda b, i: (b, i, 0)),
        out_shape=jax.ShapeDtypeStruct((n, h, wc), out_dtype),
        compiler_params=pltpu.CompilerParams(
            dimension_semantics=("parallel", "parallel"),
            vmem_limit_bytes=_VMEM_LIMIT_BYTES),
    )(scale, shift, y)


def _bn_scale_shift(sums, ssqs, gamma, beta, count, width):
    """Fold train-mode BatchNorm (biased variance) into per-channel scale/shift,
    broadcast over the flattened W*C lane axis."""
    c = gamma.shape[0]
    s = jnp.sum(sums.reshape(-1, width, c), axis=(0, 1))
    ss = jnp.sum(ssqs.reshape(-1, width, c), axis=(0, 1))
    mean = s / count
    var = ss / count - mean * mean      # biased variance (training forward)
    # TODO(synk): switch to a centered (Welford-style) per-tile combine at
    # production-scale N*H*W to avoid E[x^2]-E[x]^2 cancellation.
    scale = gamma * lax.rsqrt(var + BN_EPS)
    shift = beta - mean * scale
    return (jnp.tile(scale, width).reshape(1, width * c),
            jnp.tile(shift, width).reshape(1, width * c))


@functools.partial(jax.jit, static_argnames=("compute_dtype", "row_tile"))
def double_conv(x_nchw, w1_oihw, g1, b1, w2_oihw, g2, b2,
                *, compute_dtype=jnp.bfloat16, row_tile=None):
    """x_nchw: (N, Cin, H, W); conv weights PyTorch OIHW; gamma/beta: (C,).

    compute_dtype is the MXU-operand / inter-pass activation dtype (bf16 is the
    recommended fast path on v6e/v7x); accumulation and BN statistics stay f32.
    """
    n, cin, h, w = x_nchw.shape
    cmid = w1_oihw.shape[0]
    cout = w2_oihw.shape[0]
    if h % 8 != 0:
        # TODO(synk): pad rows and mask the BN stats for non-multiple-of-8 H.
        raise NotImplementedError("H must be a multiple of 8")
    count = n * h * w

    act_bytes = jnp.dtype(compute_dtype).itemsize
    ht = row_tile if row_tile is not None else _pick_row_tile(
        h, w, cin, cmid, cout, act_bytes)

    # Glue: NCHW -> lane-dense (N, H, W*C) once; banded weights built once.
    # TODO(synk): keep the surrounding model in this layout end-to-end.
    x = jnp.transpose(x_nchw, (0, 2, 3, 1)).reshape(n, h, w * cin)
    x = x.astype(compute_dtype)
    wb1 = _band_weights(w1_oihw, w, compute_dtype)     # (3, W*Cin,  W*Cmid)
    wb2 = _band_weights(w2_oihw, w, compute_dtype)     # (3, W*Cmid, W*Cout)

    y1, s1, q1 = _conv_bn_stats(x, wb1, None, None, ht=ht,
                                apply_input_act=False, out_dtype=compute_dtype)
    scale1, shift1 = _bn_scale_shift(s1, q1, g1, b1, count, w)
    y2, s2, q2 = _conv_bn_stats(y1, wb2, scale1, shift1, ht=ht,
                                apply_input_act=True, out_dtype=compute_dtype)
    scale2, shift2 = _bn_scale_shift(s2, q2, g2, b2, count, w)
    out = _bn_relu(y2, scale2, shift2, ht=ht, out_dtype=x_nchw.dtype)  # (N,H,W*Cout)
    return jnp.transpose(out.reshape(n, h, w, cout), (0, 3, 1, 2))


def _reference(x_nchw, w1_oihw, g1, b1, w2_oihw, g2, b2):
    """Pure-JAX f32 reference mirroring the PyTorch forward (training-mode BN)."""
    def conv(x, w):
        return lax.conv_general_dilated(
            x, w, window_strides=(1, 1), padding=((1, 1), (1, 1)),
            dimension_numbers=("NCHW", "OIHW", "NCHW"))

    def bn_relu(y, gamma, beta):
        mean = jnp.mean(y, axis=(0, 2, 3), keepdims=True)
        var = jnp.mean((y - mean) ** 2, axis=(0, 2, 3), keepdims=True)
        yn = (y - mean) * lax.rsqrt(var + BN_EPS)
        yn = yn * gamma.reshape(1, -1, 1, 1) + beta.reshape(1, -1, 1, 1)
        return jnp.maximum(yn, 0.0)

    y = bn_relu(conv(x_nchw, w1_oihw), g1, b1)
    return bn_relu(conv(y, w2_oihw), g2, b2)


if __name__ == "__main__":
    # DoubleConv(in_channels=4, out_channels=8) on a (2, 4, 16, 16) input.
    N, Cin, Cout, H, W = 2, 4, 8, 16, 16

    key = jax.random.PRNGKey(0)
    kx, kw1, kw2 = jax.random.split(key, 3)

    x = jax.random.normal(kx, (N, Cin, H, W), jnp.float32)
    w1 = jax.random.normal(kw1, (Cout, Cin, 3, 3), jnp.float32) * (2.0 / (Cin * 9)) ** 0.5
    w2 = jax.random.normal(kw2, (Cout, Cout, 3, 3), jnp.float32) * (2.0 / (Cout * 9)) ** 0.5
    # BatchNorm2d defaults: weight=1, bias=0.
    g1 = jnp.ones((Cout,), jnp.float32)
    b1 = jnp.zeros((Cout,), jnp.float32)
    g2 = jnp.ones((Cout,), jnp.float32)
    b2 = jnp.zeros((Cout,), jnp.float32)

    ref = _reference(x, w1, g1, b1, w2, g2, b2)

    # 1) f32 path with forced 8-row tiles: exercises the halo matmuls at tile
    #    seams and checks the algorithm bit-accurately against the reference.
    out_f32 = jax.block_until_ready(
        double_conv(x, w1, g1, b1, w2, g2, b2,
                    compute_dtype=jnp.float32, row_tile=8))
    assert out_f32.shape == (N, Cout, H, W)
    err_f32 = float(jnp.max(jnp.abs(out_f32 - ref)))
    assert jnp.allclose(out_f32, ref, atol=2e-3, rtol=2e-3), err_f32

    # 2) Default fast path: bf16 MXU operands + bf16 inter-pass activations
    #    (f32 accumulation / BN stats), auto row tile.  Tolerance reflects bf16.
    out_bf16 = jax.block_until_ready(double_conv(x, w1, g1, b1, w2, g2, b2))
    assert out_bf16.shape == (N, Cout, H, W)
    err_bf16 = float(jnp.max(jnp.abs(out_bf16.astype(jnp.float32) - ref)))
    assert jnp.allclose(out_bf16.astype(jnp.float32), ref,
                        atol=6e-2, rtol=6e-2), err_bf16

    print("KERNEL_OK")
</pallas_src>

<mosaic_0001>
module attributes {stable_mosaic.version = 11 : i64} {
  func.func @_conv_bn_stats_kernel(%arg0: i32, %arg1: i32, %arg2: memref<1x8x64xf32, #tpu.memory_space<vmem>>, %arg3: memref<1x8x64xf32, #tpu.memory_space<vmem>>, %arg4: memref<1x8x64xf32, #tpu.memory_space<vmem>>, %arg5: memref<3x64x128xf32, #tpu.memory_space<vmem>>, %arg6: memref<1x8x128xf32, #tpu.memory_space<vmem>>, %arg7: memref<1x1x1x128xf32, #tpu.memory_space<vmem>>, %arg8: memref<1x1x1x128xf32, #tpu.memory_space<vmem>>, %arg9: memref<8x128xf32, #tpu.memory_space<vmem>>) attributes {dimension_semantics = [#tpu.dimension_semantics<parallel>, #tpu.dimension_semantics<parallel>], iteration_bounds = array<i64: 2, 2>, scalar_prefetch = 0 : i64, scratch_operands = 1 : i64, tpu.core_type = #tpu.core_type<tc>, window_params = [{transform_indices = @transform_0, window_bounds = array<i64: 1, 8, 64>}, {transform_indices = @transform_1, window_bounds = array<i64: 1, 8, 64>}, {transform_indices = @transform_2, window_bounds = array<i64: 1, 8, 64>}, {pipeline_mode = #tpu.pipeline_mode<synchronous>, transform_indices = @transform_3, window_bounds = array<i64: 3, 64, 128>}, {transform_indices = @transform_4, window_bounds = array<i64: 1, 8, 128>}, {transform_indices = @transform_5, window_bounds = array<i64: 1, 1, 1, 128>}, {transform_indices = @transform_6, window_bounds = array<i64: 1, 1, 1, 128>}]} {
    %c0 = arith.constant 0 : index
    %c0_0 = arith.constant 0 : index
    %c0_1 = arith.constant 0 : index
    %0 = vector.load %arg3[%c0, %c0_0, %c0_1] : memref<1x8x64xf32, #tpu.memory_space<vmem>>, vector<1x8x64xf32>
    %1 = vector.shape_cast %0 : vector<1x8x64xf32> to vector<8x64xf32>
    %c0_2 = arith.constant 0 : index
    %c0_3 = arith.constant 0 : index
    %c0_4 = arith.constant 0 : index
    %2 = vector.load %arg5[%c0_2, %c0_3, %c0_4] : memref<3x64x128xf32, #tpu.memory_space<vmem>>, vector<1x64x128xf32>
    %3 = vector.shape_cast %2 : vector<1x64x128xf32> to vector<64x128xf32>
    %c1 = arith.constant 1 : index
    %c0_5 = arith.constant 0 : index
    %c0_6 = arith.constant 0 : index
    %4 = vector.load %arg5[%c1, %c0_5, %c0_6] : memref<3x64x128xf32, #tpu.memory_space<vmem>>, vector<1x64x128xf32>
    %5 = vector.shape_cast %4 : vector<1x64x128xf32> to vector<64x128xf32>
    %c2 = arith.constant 2 : index
    %c0_7 = arith.constant 0 : index
    %c0_8 = arith.constant 0 : index
    %6 = vector.load %arg5[%c2, %c0_7, %c0_8] : memref<3x64x128xf32, #tpu.memory_space<vmem>>, vector<1x64x128xf32>
    %7 = vector.shape_cast %6 : vector<1x64x128xf32> to vector<64x128xf32>
    %cst = arith.constant dense<0.000000e+00> : vector<8x128xf32>
    %8 = tpu.matmul %1, %5, %cst {dimension_numbers = #tpu.dot_dimension_numbers<[1], [0], [0], [1], [0, 0, 1, 1], [], []>} : vector<8x64xf32>, vector<64x128xf32>, vector<8x128xf32> -> vector<8x128xf32>
    %c0_9 = arith.constant 0 : index
    %c0_10 = arith.constant 0 : index
    %9 = vector.load %arg9[%c0_9, %c0_10] : memref<8x128xf32, #tpu.memory_space<vmem>>, vector<8x128xf32>
    tpu.vector_store %arg9[%c0_9, %c0_10], %8 {strides = array<i32>} : memref<8x128xf32, #tpu.memory_space<vmem>>, vector<8x128xf32>,
    %c1_11 = arith.constant 1 : index
    %c0_12 = arith.constant 0 : index
    %10 = vector.load %arg9[%c1_11, %c0_12] : memref<8x128xf32, #tpu.memory_space<vmem>>, vector<7x128xf32>
    %11 = vector.extract_strided_slice %1 {offsets = [0, 0], sizes = [7, 64], strides = [1, 1]} : vector<8x64xf32> to vector<7x64xf32>
    %cst_13 = arith.constant dense<0.000000e+00> : vector<7x128xf32>
    %12 = tpu.matmul %11, %3, %cst_13 {dimension_numbers = #tpu.dot_dimension_numbers<[1], [0], [0], [1], [0, 0, 1, 1], [], []>} : vector<7x64xf32>, vector<64x128xf32>, vector<7x128xf32> -> vector<7x128xf32>
    %13 = arith.addf %10, %12 : vector<7x128xf32>
    %c1_14 = arith.constant 1 : index
    %c0_15 = arith.constant 0 : index
    %14 = vector.load %arg9[%c1_14, %c0_15] : memref<8x128xf32, #tpu.memory_space<vmem>>, vector<7x128xf32>
    tpu.vector_store %arg9[%c1_14, %c0_15], %13 {strides = array<i32>} : memref<8x128xf32, #tpu.memory_space<vmem>>, vector<7x128xf32>,
    %c0_16 = arith.constant 0 : index
    %c0_17 = arith.constant 0 : index
    %15 = vector.load %arg9[%c0_16, %c0_17] : memref<8x128xf32, #tpu.memory_space<vmem>>, vector<7x128xf32>
    %16 = vector.extract_strided_slice %1 {offsets = [1, 0], sizes = [7, 64], strides = [1, 1]} : vector<8x64xf32> to vector<7x64xf32>
    %cst_18 = arith.constant dense<0.000000e+00> : vector<7x128xf32>
    %17 = tpu.matmul %16, %7, %cst_18 {dimension_numbers = #tpu.dot_dimension_numbers<[1], [0], [0], [1], [0, 0, 1, 1], [], []>} : vector<7x64xf32>, vector<64x128xf32>, vector<7x128xf32> -> vector<7x128xf32>
    %18 = arith.addf %15, %17 : vector<7x128xf32>
    %c0_19 = arith.constant 0 : index
    %c0_20 = arith.constant 0 : index
    %19 = vector.load %arg9[%c0_19, %c0_20] : memref<8x128xf32, #tpu.memory_space<vmem>>, vector<7x128xf32>
    tpu.vector_store %arg9[%c0_19, %c0_20], %18 {strides = array<i32>} : memref<8x128xf32, #tpu.memory_space<vmem>>, vector<7x128xf32>,
    %c0_i32 = arith.constant 0 : i32
    %20 = arith.cmpi sgt, %arg1, %c0_i32 : i32
    %21 = arith.extui %20 : i1 to i32
    %c0_i32_21 = arith.constant 0 : i32
    %22 = arith.cmpi ne, %21, %c0_i32_21 : i32
    scf.if %22 {
      %c0_38 = arith.constant 0 : index
      %c0_39 = arith.constant 0 : index
      %41 = vector.load %arg9[%c0_38, %c0_39] : memref<8x128xf32, #tpu.memory_space<vmem>>, vector<1x128xf32>
      %c0_40 = arith.constant 0 : index
      %c7 = arith.constant 7 : index
      %c0_41 = arith.constant 0 : index
      %42 = vector.load %arg2[%c0_40, %c7, %c0_41] : memref<1x8x64xf32, #tpu.memory_space<vmem>>, vector<1x1x64xf32>
      %43 = vector.shape_cast %42 : vector<1x1x64xf32> to vector<1x64xf32>
      %cst_42 = arith.constant dense<0.000000e+00> : vector<1x128xf32>
      %44 = tpu.matmul %43, %3, %cst_42 {dimension_numbers = #tpu.dot_dimension_numbers<[1], [0], [0], [1], [0, 0, 1, 1], [], []>} : vector<1x64xf32>, vector<64x128xf32>, vector<1x128xf32> -> vector<1x128xf32>
      %45 = arith.addf %41, %44 : vector<1x128xf32>
      %c0_43 = arith.constant 0 : index
      %c0_44 = arith.constant 0 : index
      %46 = vector.load %arg9[%c0_43, %c0_44] : memref<8x128xf32, #tpu.memory_space<vmem>>, vector<1x128xf32>
      tpu.vector_store %arg9[%c0_43, %c0_44], %45 {strides = array<i32>} : memref<8x128xf32, #tpu.memory_space<vmem>>, vector<1x128xf32>,
    } else {
    }
    %c1_i32 = arith.constant 1 : i32
    %23 = arith.cmpi slt, %arg1, %c1_i32 : i32
    %24 = arith.extui %23 : i1 to i32
    %c0_i32_22 = arith.constant 0 : i32
    %25 = arith.cmpi ne, %24, %c0_i32_22 : i32
    scf.if %25 {
      %c7 = arith.constant 7 : index
      %c0_38 = arith.constant 0 : index
      %41 = vector.load %arg9[%c7, %c0_38] : memref<8x128xf32, #tpu.memory_space<vmem>>, vector<1x128xf32>
      %c0_39 = arith.constant 0 : index
      %c0_40 = arith.constant 0 : index
      %c0_41 = arith.constant 0 : index
      %42 = vector.load %arg4[%c0_39, %c0_40, %c0_41] : memref<1x8x64xf32, #tpu.memory_space<vmem>>, vector<1x1x64xf32>
      %43 = vector.shape_cast %42 : vector<1x1x64xf32> to vector<1x64xf32>
      %cst_42 = arith.constant dense<0.000000e+00> : vector<1x128xf32>
      %44 = tpu.matmul %43, %7, %cst_42 {dimension_numbers = #tpu.dot_dimension_numbers<[1], [0], [0], [1], [0, 0, 1, 1], [], []>} : vector<1x64xf32>, vector<64x128xf32>, vector<1x128xf32> -> vector<1x128xf32>
      %45 = arith.addf %41, %44 : vector<1x128xf32>
      %c7_43 = arith.constant 7 : index
      %c0_44 = arith.constant 0 : index
      %46 = vector.load %arg9[%c7_43, %c0_44] : memref<8x128xf32, #tpu.memory_space<vmem>>, vector<1x128xf32>
      tpu.vector_store %arg9[%c7_43, %c0_44], %45 {strides = array<i32>} : memref<8x128xf32, #tpu.memory_space<vmem>>, vector<1x128xf32>,
    } else {
    }
    %c0_23 = arith.constant 0 : index
    %c0_24 = arith.constant 0 : index
    %26 = vector.load %arg9[%c0_23, %c0_24] : memref<8x128xf32, #tpu.memory_space<vmem>>, vector<8x128xf32>
    %cst_25 = arith.constant dense<0.000000e+00> : vector<128xf32>
    %27 = vector.multi_reduction <add>, %26, %cst_25 [0] : vector<8x128xf32> to vector<128xf32>
    %28 = vector.shape_cast %27 : vector<128xf32> to vector<1x128xf32>
    %c0_26 = arith.constant 0 : index
    %c0_27 = arith.constant 0 : index
    %c0_28 = arith.constant 0 : index
    %c0_29 = arith.constant 0 : index
    %29 = vector.load %arg7[%c0_26, %c0_27, %c0_28, %c0_29] : memref<1x1x1x128xf32, #tpu.memory_space<vmem>>, vector<1x1x1x128xf32>
    %30 = vector.shape_cast %29 : vector<1x1x1x128xf32> to vector<1x128xf32>
    %31 = vector.shape_cast %28 : vector<1x128xf32> to vector<1x1x1x128xf32>
    tpu.vector_store %arg7[%c0_26, %c0_27, %c0_28, %c0_29], %31 {strides = array<i32>} : memref<1x1x1x128xf32, #tpu.memory_space<vmem>>, vector<1x1x1x128xf32>,
    %32 = arith.mulf %26, %26 : vector<8x128xf32>
    %cst_30 = arith.constant dense<0.000000e+00> : vector<128xf32>
    %33 = vector.multi_reduction <add>, %32, %cst_30 [0] : vector<8x128xf32> to vector<128xf32>
    %34 = vector.shape_cast %33 : vector<128xf32> to vector<1x128xf32>
    %c0_31 = arith.constant 0 : index
    %c0_32 = arith.constant 0 : index
    %c0_33 = arith.constant 0 : index
    %c0_34 = arith.constant 0 : index
    %35 = vector.load %arg8[%c0_31, %c0_32, %c0_33, %c0_34] : memref<1x1x1x128xf32, #tpu.memory_space<vmem>>, vector<1x1x1x128xf32>
    %36 = vector.shape_cast %35 : vector<1x1x1x128xf32> to vector<1x128xf32>
    %37 = vector.shape_cast %34 : vector<1x128xf32> to vector<1x1x1x128xf32>
    tpu.vector_store %arg8[%c0_31, %c0_32, %c0_33, %c0_34], %37 {strides = array<i32>} : memref<1x1x1x128xf32, #tpu.memory_space<vmem>>, vector<1x1x1x128xf32>,
    %c0_35 = arith.constant 0 : index
    %c0_36 = arith.constant 0 : index
    %c0_37 = arith.constant 0 : index
    %38 = vector.load %arg6[%c0_35, %c0_36, %c0_37] : memref<1x8x128xf32, #tpu.memory_space<vmem>>, vector<1x8x128xf32>
    %39 = vector.shape_cast %38 : vector<1x8x128xf32> to vector<8x128xf32>
    %40 = vector.shape_cast %26 : vector<8x128xf32> to vector<1x8x128xf32>
    tpu.vector_store %arg6[%c0_35, %c0_36, %c0_37], %40 {strides = array<i32>} : memref<1x8x128xf32, #tpu.memory_space<vmem>>, vector<1x8x128xf32>,
    return
  }
  func.func @transform_0(%arg0: i32, %arg1: i32) -> (i32, i32, i32) {
    %c1_i32 = arith.constant 1 : i32
    %0 = arith.muli %arg1, %c1_i32 : i32
    %c1_i32_0 = arith.constant 1 : i32
    %1 = arith.subi %0, %c1_i32_0 : i32
    %c0_i32 = arith.constant 0 : i32
    %2 = arith.maxsi %1, %c0_i32 : i32
    %c0_i32_1 = arith.constant 0 : i32
    %c0_i32_2 = arith.constant 0 : i32
    return %arg0, %2, %c0_i32_1 : i32, i32, i32
  }
  func.func @transform_1(%arg0: i32, %arg1: i32) -> (i32, i32, i32) {
    %c0_i32 = arith.constant 0 : i32
    %c0_i32_0 = arith.constant 0 : i32
    return %arg0, %arg1, %c0_i32 : i32, i32, i32
  }
  func.func @transform_2(%arg0: i32, %arg1: i32) -> (i32, i32, i32) {
    %c1_i32 = arith.constant 1 : i32
    %0 = arith.addi %arg1, %c1_i32 : i32
    %c1_i32_0 = arith.constant 1 : i32
    %1 = arith.muli %0, %c1_i32_0 : i32
    %c1_i32_1 = arith.constant 1 : i32
    %2 = arith.minsi %1, %c1_i32_1 : i32
    %c0_i32 = arith.constant 0 : i32
    %c0_i32_2 = arith.constant 0 : i32
    return %arg0, %2, %c0_i32 : i32, i32, i32
  }
  func.func @transform_3(%arg0: i32, %arg1: i32) -> (i32, i32, i32) {
    %c0_i32 = arith.constant 0 : i32
    %c0_i32_0 = arith.constant 0 : i32
    %c0_i32_1 = arith.constant 0 : i32
    %c0_i32_2 = arith.constant 0 : i32
    return %c0_i32, %c0_i32_0, %c0_i32_1 : i32, i32, i32
  }
  func.func @transform_4(%arg0: i32, %arg1: i32) -> (i32, i32, i32) {
    %c0_i32 = arith.constant 0 : i32
    %c0_i32_0 = arith.constant 0 : i32
    return %arg0, %arg1, %c0_i32 : i32, i32, i32
  }
  func.func @transform_5(%arg0: i32, %arg1: i32) -> (i32, i32, i32, i32) {
    %c0_i32 = arith.constant 0 : i32
    %c0_i32_0 = arith.constant 0 : i32
    %c0_i32_1 = arith.constant 0 : i32
    return %arg0, %arg1, %c0_i32, %c0_i32_0 : i32, i32, i32, i32
  }
  func.func @transform_6(%arg0: i32, %arg1: i32) -> (i32, i32, i32, i32) {
    %c0_i32 = arith.constant 0 : i32
    %c0_i32_0 = arith.constant 0 : i32
    %c0_i32_1 = arith.constant 0 : i32
    return %arg0, %arg1, %c0_i32, %c0_i32_0 : i32, i32, i32, i32
  }
}

module attributes {stable_mosaic.version = 11 : i64} {
  func.func @_conv_bn_stats_kernel(%arg0: i32, %arg1: i32, %arg2: memref<1x128xf32, #tpu.memory_space<vmem>>, %arg3: memref<1x128xf32, #tpu.memory_space<vmem>>, %arg4: memref<1x8x128xf32, #tpu.memory_space<vmem>>, %arg5: memref<1x8x128xf32, #tpu.memory_space<vmem>>, %arg6: memref<1x8x128xf32, #tpu.memory_space<vmem>>, %arg7: memref<3x128x128xf32, #tpu.memory_space<vmem>>, %arg8: memref<1x8x128xf32, #tpu.memory_space<vmem>>, %arg9: memref<1x1x1x128xf32, #tpu.memory_space<vmem>>, %arg10: memref<1x1x1x128xf32, #tpu.memory_space<vmem>>, %arg11: memref<8x128xf32, #tpu.memory_space<vmem>>) attributes {dimension_semantics = [#tpu.dimension_semantics<parallel>, #tpu.dimension_semantics<parallel>], iteration_bounds = array<i64: 2, 2>, scalar_prefetch = 0 : i64, scratch_operands = 1 : i64, tpu.core_type = #tpu.core_type<tc>, window_params = [{pipeline_mode = #tpu.pipeline_mode<synchronous>, transform_indices = @transform_0, window_bounds = array<i64: 1, 128>}, {pipeline_mode = #tpu.pipeline_mode<synchronous>, transform_indices = @transform_1, window_bounds = array<i64: 1, 128>}, {transform_indices = @transform_2, window_bounds = array<i64: 1, 8, 128>}, {transform_indices = @transform_3, window_bounds = array<i64: 1, 8, 128>}, {transform_indices = @transform_4, window_bounds = array<i64: 1, 8, 128>}, {pipeline_mode = #tpu.pipeline_mode<synchronous>, transform_indices = @transform_5, window_bounds = array<i64: 3, 128, 128>}, {transform_indices = @transform_6, window_bounds = array<i64: 1, 8, 128>}, {transform_indices = @transform_7, window_bounds = array<i64: 1, 1, 1, 128>}, {transform_indices = @transform_8, window_bounds = array<i64: 1, 1, 1, 128>}]} {
    %c0 = arith.constant 0 : index
    %c0_0 = arith.constant 0 : index
    %c0_1 = arith.constant 0 : index
    %0 = vector.load %arg5[%c0, %c0_0, %c0_1] : memref<1x8x128xf32, #tpu.memory_space<vmem>>, vector<1x8x128xf32>
    %1 = vector.shape_cast %0 : vector<1x8x128xf32> to vector<8x128xf32>
    %c0_2 = arith.constant 0 : index
    %c0_3 = arith.constant 0 : index
    %2 = vector.load %arg2[%c0_2, %c0_3] : memref<1x128xf32, #tpu.memory_space<vmem>>, vector<1x128xf32>
    %3 = vector.broadcast %2 : vector<1x128xf32> to vector<8x128xf32>
    %4 = arith.mulf %1, %3 : vector<8x128xf32>
    %c0_4 = arith.constant 0 : index
    %c0_5 = arith.constant 0 : index
    %5 = vector.load %arg3[%c0_4, %c0_5] : memref<1x128xf32, #tpu.memory_space<vmem>>, vector<1x128xf32>
    %6 = vector.broadcast %5 : vector<1x128xf32> to vector<8x128xf32>
    %7 = arith.addf %4, %6 : vector<8x128xf32>
    %cst = arith.constant 0.000000e+00 : f32
    %8 = vector.broadcast %cst : f32 to vector<8x128xf32>
    %9 = arith.maximumf %7, %8 : vector<8x128xf32>
    %c0_6 = arith.constant 0 : index
    %c0_7 = arith.constant 0 : index
    %c0_8 = arith.constant 0 : index
    %10 = vector.load %arg7[%c0_6, %c0_7, %c0_8] : memref<3x128x128xf32, #tpu.memory_space<vmem>>, vector<1x128x128xf32>
    %11 = vector.shape_cast %10 : vector<1x128x128xf32> to vector<128x128xf32>
    %c1 = arith.constant 1 : index
    %c0_9 = arith.constant 0 : index
    %c0_10 = arith.constant 0 : index
    %12 = vector.load %arg7[%c1, %c0_9, %c0_10] : memref<3x128x128xf32, #tpu.memory_space<vmem>>, vector<1x128x128xf32>
    %13 = vector.shape_cast %12 : vector<1x128x128xf32> to vector<128x128xf32>
    %c2 = arith.constant 2 : index
    %c0_11 = arith.constant 0 : index
    %c0_12 = arith.constant 0 : index
    %14 = vector.load %arg7[%c2, %c0_11, %c0_12] : memref<3x128x128xf32, #tpu.memory_space<vmem>>, vector<1x128x128xf32>
    %15 = vector.shape_cast %14 : vector<1x128x128xf32> to vector<128x128xf32>
    %cst_13 = arith.constant dense<0.000000e+00> : vector<8x128xf32>
    %16 = tpu.matmul %9, %13, %cst_13 {dimension_numbers = #tpu.dot_dimension_numbers<[1], [0], [0], [1], [0, 0, 1, 1], [], []>} : vector<8x128xf32>, vector<128x128xf32>, vector<8x128xf32> -> vector<8x128xf32>
    %c0_14 = arith.constant 0 : index
    %c0_15 = arith.constant 0 : index
    %17 = vector.load %arg11[%c0_14, %c0_15] : memref<8x128xf32, #tpu.memory_space<vmem>>, vector<8x128xf32>
    tpu.vector_store %arg11[%c0_14, %c0_15], %16 {strides = array<i32>} : memref<8x128xf32, #tpu.memory_space<vmem>>, vector<8x128xf32>,
    %c1_16 = arith.constant 1 : index
    %c0_17 = arith.constant 0 : index
    %18 = vector.load %arg11[%c1_16, %c0_17] : memref<8x128xf32, #tpu.memory_space<vmem>>, vector<7x128xf32>
    %19 = vector.extract_strided_slice %9 {offsets = [0, 0], sizes = [7, 128], strides = [1, 1]} : vector<8x128xf32> to vector<7x128xf32>
    %cst_18 = arith.constant dense<0.000000e+00> : vector<7x128xf32>
    %20 = tpu.matmul %19, %11, %cst_18 {dimension_numbers = #tpu.dot_dimension_numbers<[1], [0], [0], [1], [0, 0, 1, 1], [], []>} : vector<7x128xf32>, vector<128x128xf32>, vector<7x128xf32> -> vector<7x128xf32>
    %21 = arith.addf %18, %20 : vector<7x128xf32>
    %c1_19 = arith.constant 1 : index
    %c0_20 = arith.constant 0 : index
    %22 = vector.load %arg11[%c1_19, %c0_20] : memref<8x128xf32, #tpu.memory_space<vmem>>, vector<7x128xf32>
    tpu.vector_store %arg11[%c1_19, %c0_20], %21 {strides = array<i32>} : memref<8x128xf32, #tpu.memory_space<vmem>>, vector<7x128xf32>,
    %c0_21 = arith.constant 0 : index
    %c0_22 = arith.constant 0 : index
    %23 = vector.load %arg11[%c0_21, %c0_22] : memref<8x128xf32, #tpu.memory_space<vmem>>, vector<7x128xf32>
    %24 = vector.extract_strided_slice %9 {offsets = [1, 0], sizes = [7, 128], strides = [1, 1]} : vector<8x128xf32> to vector<7x128xf32>
    %cst_23 = arith.constant dense<0.000000e+00> : vector<7x128xf32>
    %25 = tpu.matmul %24, %15, %cst_23 {dimension_numbers = #tpu.dot_dimension_numbers<[1], [0], [0], [1], [0, 0, 1, 1], [], []>} : vector<7x128xf32>, vector<128x128xf32>, vector<7x128xf32> -> vector<7x128xf32>
    %26 = arith.addf %23, %25 : vector<7x128xf32>
    %c0_24 = arith.constant 0 : index
    %c0_25 = arith.constant 0 : index
    %27 = vector.load %arg11[%c0_24, %c0_25] : memref<8x128xf32, #tpu.memory_space<vmem>>, vector<7x128xf32>
    tpu.vector_store %arg11[%c0_24, %c0_25], %26 {strides = array<i32>} : memref<8x128xf32, #tpu.memory_space<vmem>>, vector<7x128xf32>,
    %c0_i32 = arith.constant 0 : i32
    %28 = arith.cmpi sgt, %arg1, %c0_i32 : i32
    %29 = arith.extui %28 : i1 to i32
    %c0_i32_26 = arith.constant 0 : i32
    %30 = arith.cmpi ne, %29, %c0_i32_26 : i32
    scf.if %30 {
      %c0_43 = arith.constant 0 : index
      %c0_44 = arith.constant 0 : index
      %49 = vector.load %arg11[%c0_43, %c0_44] : memref<8x128xf32, #tpu.memory_space<vmem>>, vector<1x128xf32>
      %c0_45 = arith.constant 0 : index
      %c7 = arith.constant 7 : index
      %c0_46 = arith.constant 0 : index
      %50 = vector.load %arg4[%c0_45, %c7, %c0_46] : memref<1x8x128xf32, #tpu.memory_space<vmem>>, vector<1x1x128xf32>
      %51 = vector.shape_cast %50 : vector<1x1x128xf32> to vector<1x128xf32>
      %c0_47 = arith.constant 0 : index
      %c0_48 = arith.constant 0 : index
      %52 = vector.load %arg2[%c0_47, %c0_48] : memref<1x128xf32, #tpu.memory_space<vmem>>, vector<1x128xf32>
      %53 = arith.mulf %51, %52 : vector<1x128xf32>
      %c0_49 = arith.constant 0 : index
      %c0_50 = arith.constant 0 : index
      %54 = vector.load %arg3[%c0_49, %c0_50] : memref<1x128xf32, #tpu.memory_space<vmem>>, vector<1x128xf32>
      %55 = arith.addf %53, %54 : vector<1x128xf32>
      %cst_51 = arith.constant 0.000000e+00 : f32
      %56 = vector.broadcast %cst_51 : f32 to vector<1x128xf32>
      %57 = arith.maximumf %55, %56 : vector<1x128xf32>
      %cst_52 = arith.constant dense<0.000000e+00> : vector<1x128xf32>
      %58 = tpu.matmul %57, %11, %cst_52 {dimension_numbers = #tpu.dot_dimension_numbers<[1], [0], [0], [1], [0, 0, 1, 1], [], []>} : vector<1x128xf32>, vector<128x128xf32>, vector<1x128xf32> -> vector<1x128xf32>
      %59 = arith.addf %49, %58 : vector<1x128xf32>
      %c0_53 = arith.constant 0 : index
      %c0_54 = arith.constant 0 : index
      %60 = vector.load %arg11[%c0_53, %c0_54] : memref<8x128xf32, #tpu.memory_space<vmem>>, vector<1x128xf32>
      tpu.vector_store %arg11[%c0_53, %c0_54], %59 {strides = array<i32>} : memref<8x128xf32, #tpu.memory_space<vmem>>, vector<1x128xf32>,
    } else {
    }
    %c1_i32 = arith.constant 1 : i32
    %31 = arith.cmpi slt, %arg1, %c1_i32 : i32
    %32 = arith.extui %31 : i1 to i32
    %c0_i32_27 = arith.constant 0 : i32
    %33 = arith.cmpi ne, %32, %c0_i32_27 : i32
    scf.if %33 {
      %c7 = arith.constant 7 : index
      %c0_43 = arith.constant 0 : index
      %49 = vector.load %arg11[%c7, %c0_43] : memref<8x128xf32, #tpu.memory_space<vmem>>, vector<1x128xf32>
      %c0_44 = arith.constant 0 : index
      %c0_45 = arith.constant 0 : index
      %c0_46 = arith.constant 0 : index
      %50 = vector.load %arg6[%c0_44, %c0_45, %c0_46] : memref<1x8x128xf32, #tpu.memory_space<vmem>>, vector<1x1x128xf32>
      %51 = vector.shape_cast %50 : vector<1x1x128xf32> to vector<1x128xf32>
      %c0_47 = arith.constant 0 : index
      %c0_48 = arith.constant 0 : index
      %52 = vector.load %arg2[%c0_47, %c0_48] : memref<1x128xf32, #tpu.memory_space<vmem>>, vector<1x128xf32>
      %53 = arith.mulf %51, %52 : vector<1x128xf32>
      %c0_49 = arith.constant 0 : index
      %c0_50 = arith.constant 0 : index
      %54 = vector.load %arg3[%c0_49, %c0_50] : memref<1x128xf32, #tpu.memory_space<vmem>>, vector<1x128xf32>
      %55 = arith.addf %53, %54 : vector<1x128xf32>
      %cst_51 = arith.constant 0.000000e+00 : f32
      %56 = vector.broadcast %cst_51 : f32 to vector<1x128xf32>
      %57 = arith.maximumf %55, %56 : vector<1x128xf32>
      %cst_52 = arith.constant dense<0.000000e+00> : vector<1x128xf32>
      %58 = tpu.matmul %57, %15, %cst_52 {dimension_numbers = #tpu.dot_dimension_numbers<[1], [0], [0], [1], [0, 0, 1, 1], [], []>} : vector<1x128xf32>, vector<128x128xf32>, vector<1x128xf32> -> vector<1x128xf32>
      %59 = arith.addf %49, %58 : vector<1x128xf32>
      %c7_53 = arith.constant 7 : index
      %c0_54 = arith.constant 0 : index
      %60 = vector.load %arg11[%c7_53, %c0_54] : memref<8x128xf32, #tpu.memory_space<vmem>>, vector<1x128xf32>
      tpu.vector_store %arg11[%c7_53, %c0_54], %59 {strides = array<i32>} : memref<8x128xf32, #tpu.memory_space<vmem>>, vector<1x128xf32>,
    } else {
    }
    %c0_28 = arith.constant 0 : index
    %c0_29 = arith.constant 0 : index
    %34 = vector.load %arg11[%c0_28, %c0_29] : memref<8x128xf32, #tpu.memory_space<vmem>>, vector<8x128xf32>
    %cst_30 = arith.constant dense<0.000000e+00> : vector<128xf32>
    %35 = vector.multi_reduction <add>, %34, %cst_30 [0] : vector<8x128xf32> to vector<128xf32>
    %36 = vector.shape_cast %35 : vector<128xf32> to vector<1x128xf32>
    %c0_31 = arith.constant 0 : index
    %c0_32 = arith.constant 0 : index
    %c0_33 = arith.constant 0 : index
    %c0_34 = arith.constant 0 : index
    %37 = vector.load %arg9[%c0_31, %c0_32, %c0_33, %c0_34] : memref<1x1x1x128xf32, #tpu.memory_space<vmem>>, vector<1x1x1x128xf32>
    %38 = vector.shape_cast %37 : vector<1x1x1x128xf32> to vector<1x128xf32>
    %39 = vector.shape_cast %36 : vector<1x128xf32> to vector<1x1x1x128xf32>
    tpu.vector_store %arg9[%c0_31, %c0_32, %c0_33, %c0_34], %39 {strides = array<i32>} : memref<1x1x1x128xf32, #tpu.memory_space<vmem>>, vector<1x1x1x128xf32>,
    %40 = arith.mulf %34, %34 : vector<8x128xf32>
    %cst_35 = arith.constant dense<0.000000e+00> : vector<128xf32>
    %41 = vector.multi_reduction <add>, %40, %cst_35 [0] : vector<8x128xf32> to vector<128xf32>
    %42 = vector.shape_cast %41 : vector<128xf32> to vector<1x128xf32>
    %c0_36 = arith.constant 0 : index
    %c0_37 = arith.constant 0 : index
    %c0_38 = arith.constant 0 : index
    %c0_39 = arith.constant 0 : index
    %43 = vector.load %arg10[%c0_36, %c0_37, %c0_38, %c0_39] : memref<1x1x1x128xf32, #tpu.memory_space<vmem>>, vector<1x1x1x128xf32>
    %44 = vector.shape_cast %43 : vector<1x1x1x128xf32> to vector<1x128xf32>
    %45 = vector.shape_cast %42 : vector<1x128xf32> to vector<1x1x1x128xf32>
    tpu.vector_store %arg10[%c0_36, %c0_37, %c0_38, %c0_39], %45 {strides = array<i32>} : memref<1x1x1x128xf32, #tpu.memory_space<vmem>>, vector<1x1x1x128xf32>,
    %c0_40 = arith.constant 0 : index
    %c0_41 = arith.constant 0 : index
    %c0_42 = arith.constant 0 : index
    %46 = vector.load %arg8[%c0_40, %c0_41, %c0_42] : memref<1x8x128xf32, #tpu.memory_space<vmem>>, vector<1x8x128xf32>
    %47 = vector.shape_cast %46 : vector<1x8x128xf32> to vector<8x128xf32>
    %48 = vector.shape_cast %34 : vector<8x128xf32> to vector<1x8x128xf32>
    tpu.vector_store %arg8[%c0_40, %c0_41, %c0_42], %48 {strides = array<i32>} : memref<1x8x128xf32, #tpu.memory_space<vmem>>, vector<1x8x128xf32>,
    return
  }
  func.func @transform_0(%arg0: i32, %arg1: i32) -> (i32, i32) {
    %c0_i32 = arith.constant 0 : i32
    %c0_i32_0 = arith.constant 0 : i32
    %c0_i32_1 = arith.constant 0 : i32
    return %c0_i32, %c0_i32_0 : i32, i32
  }
  func.func @transform_1(%arg0: i32, %arg1: i32) -> (i32, i32) {
    %c0_i32 = arith.constant 0 : i32
    %c0_i32_0 = arith.constant 0 : i32
    %c0_i32_1 = arith.constant 0 : i32
    return %c0_i32, %c0_i32_0 : i32, i32
  }
  func.func @transform_2(%arg0: i32, %arg1: i32) -> (i32, i32, i32) {
    %c1_i32 = arith.constant 1 : i32
    %0 = arith.muli %arg1, %c1_i32 : i32
    %c1_i32_0 = arith.constant 1 : i32
    %1 = arith.subi %0, %c1_i32_0 : i32
    %c0_i32 = arith.constant 0 : i32
    %2 = arith.maxsi %1, %c0_i32 : i32
    %c0_i32_1 = arith.constant 0 : i32
    %c0_i32_2 = arith.constant 0 : i32
    return %arg0, %2, %c0_i32_1 : i32, i32, i32
  }
  func.func @transform_3(%arg0: i32, %arg1: i32) -> (i32, i32, i32) {
    %c0_i32 = arith.constant 0 : i32
    %c0_i32_0 = arith.constant 0 : i32
    return %arg0, %arg1, %c0_i32 : i32, i32, i32
  }
  func.func @transform_4(%arg0: i32, %arg1: i32) -> (i32, i32, i32) {
    %c1_i32 = arith.constant 1 : i32
    %0 = arith.addi %arg1, %c1_i32 : i32
    %c1_i32_0 = arith.constant 1 : i32
    %1 = arith.muli %0, %c1_i32_0 : i32
    %c1_i32_1 = arith.constant 1 : i32
    %2 = arith.minsi %1, %c1_i32_1 : i32
    %c0_i32 = arith.constant 0 : i32
    %c0_i32_2 = arith.constant 0 : i32
    return %arg0, %2, %c0_i32 : i32, i32, i32
  }
  func.func @transform_5(%arg0: i32, %arg1: i32) -> (i32, i32, i32) {
    %c0_i32 = arith.constant 0 : i32
    %c0_i32_0 = arith.constant 0 : i32
    %c0_i32_1 = arith.constant 0 : i32
    %c0_i32_2 = arith.constant 0 : i32
    return %c0_i32, %c0_i32_0, %c0_i32_1 : i32, i32, i32
  }
  func.func @transform_6(%arg0: i32, %arg1: i32) -> (i32, i32, i32) {
    %c0_i32 = arith.constant 0 : i32
    %c0_i32_0 = arith.constant 0 : i32
    return %arg0, %arg1, %c0_i32 : i32, i32, i32
  }
  func.func @transform_7(%arg0: i32, %arg1: i32) -> (i32, i32, i32, i32) {
    %c0_i32 = arith.constant 0 : i32
    %c0_i32_0 = arith.constant 0 : i32
    %c0_i32_1 = arith.constant 0 : i32
    return %arg0, %arg1, %c0_i32, %c0_i32_0 : i32, i32, i32, i32
  }
  func.func @transform_8(%arg0: i32, %arg1: i32) -> (i32, i32, i32, i32) {
    %c0_i32 = arith.constant 0 : i32
    %c0_i32_0 = arith.constant 0 : i32
    %c0_i32_1 = arith.constant 0 : i32
    return %arg0, %arg1, %c0_i32, %c0_i32_0 : i32, i32, i32, i32
  }
}

module attributes {stable_mosaic.version = 11 : i64} {
  func.func @_bn_relu_kernel(%arg0: i32, %arg1: i32, %arg2: memref<1x128xf32, #tpu.memory_space<vmem>>, %arg3: memref<1x128xf32, #tpu.memory_space<vmem>>, %arg4: memref<1x8x128xf32, #tpu.memory_space<vmem>>, %arg5: memref<1x8x128xf32, #tpu.memory_space<vmem>>) attributes {dimension_semantics = [#tpu.dimension_semantics<parallel>, #tpu.dimension_semantics<parallel>], iteration_bounds = array<i64: 2, 2>, scalar_prefetch = 0 : i64, scratch_operands = 0 : i64, tpu.core_type = #tpu.core_type<tc>, window_params = [{pipeline_mode = #tpu.pipeline_mode<synchronous>, transform_indices = @transform_0, window_bounds = array<i64: 1, 128>}, {pipeline_mode = #tpu.pipeline_mode<synchronous>, transform_indices = @transform_1, window_bounds = array<i64: 1, 128>}, {transform_indices = @transform_2, window_bounds = array<i64: 1, 8, 128>}, {transform_indices = @transform_3, window_bounds = array<i64: 1, 8, 128>}]} {
    %c0 = arith.constant 0 : index
    %c0_0 = arith.constant 0 : index
    %c0_1 = arith.constant 0 : index
    %0 = vector.load %arg4[%c0, %c0_0, %c0_1] : memref<1x8x128xf32, #tpu.memory_space<vmem>>, vector<1x8x128xf32>
    %1 = vector.shape_cast %0 : vector<1x8x128xf32> to vector<8x128xf32>
    %c0_2 = arith.constant 0 : index
    %c0_3 = arith.constant 0 : index
    %2 = vector.load %arg2[%c0_2, %c0_3] : memref<1x128xf32, #tpu.memory_space<vmem>>, vector<1x128xf32>
    %3 = vector.broadcast %2 : vector<1x128xf32> to vector<8x128xf32>
    %4 = arith.mulf %1, %3 : vector<8x128xf32>
    %c0_4 = arith.constant 0 : index
    %c0_5 = arith.constant 0 : index
    %5 = vector.load %arg3[%c0_4, %c0_5] : memref<1x128xf32, #tpu.memory_space<vmem>>, vector<1x128xf32>
    %6 = vector.broadcast %5 : vector<1x128xf32> to vector<8x128xf32>
    %7 = arith.addf %4, %6 : vector<8x128xf32>
    %cst = arith.constant 0.000000e+00 : f32
    %8 = vector.broadcast %cst : f32 to vector<8x128xf32>
    %9 = arith.maximumf %7, %8 : vector<8x128xf32>
    %c0_6 = arith.constant 0 : index
    %c0_7 = arith.constant 0 : index
    %c0_8 = arith.constant 0 : index
    %10 = vector.load %arg5[%c0_6, %c0_7, %c0_8] : memref<1x8x128xf32, #tpu.memory_space<vmem>>, vector<1x8x128xf32>
    %11 = vector.shape_cast %10 : vector<1x8x128xf32> to vector<8x128xf32>
    %12 = vector.shape_cast %9 : vector<8x128xf32> to vector<1x8x128xf32>
    tpu.vector_store %arg5[%c0_6, %c0_7, %c0_8], %12 {strides = array<i32>} : memref<1x8x128xf32, #tpu.memory_space<vmem>>, vector<1x8x128xf32>,
    return
  }
  func.func @transform_0(%arg0: i32, %arg1: i32) -> (i32, i32) {
    %c0_i32 = arith.constant 0 : i32
    %c0_i32_0 = arith.constant 0 : i32
    %c0_i32_1 = arith.constant 0 : i32
    return %c0_i32, %c0_i32_0 : i32, i32
  }
  func.func @transform_1(%arg0: i32, %arg1: i32) -> (i32, i32) {
    %c0_i32 = arith.constant 0 : i32
    %c0_i32_0 = arith.constant 0 : i32
    %c0_i32_1 = arith.constant 0 : i32
    return %c0_i32, %c0_i32_0 : i32, i32
  }
  func.func @transform_2(%arg0: i32, %arg1: i32) -> (i32, i32, i32) {
    %c0_i32 = arith.constant 0 : i32
    %c0_i32_0 = arith.constant 0 : i32
    return %arg0, %arg1, %c0_i32 : i32, i32, i32
  }
  func.func @transform_3(%arg0: i32, %arg1: i32) -> (i32, i32, i32) {
    %c0_i32 = arith.constant 0 : i32
    %c0_i32_0 = arith.constant 0 : i32
    return %arg0, %arg1, %c0_i32 : i32, i32, i32
  }
}

</mosaic_0001>

<bundles_post_ra>
// kernel: tile.28
= control target key start
LH: loop header
LB: loop body
LE: loop exit
PB: predicated region body
PF: predicated region fallthrough
CT: control target
= control target key end

     0   :  { %s28_s0 = inlined_call_operand.vmem [shape: f32[8], index: 0, kind: input, shape index: {}]   ;;  %s29_s1 = inlined_call_operand.vmem [shape: f32[16,8], index: 1, kind: output, shape index: {}]  }
   0x1   :  { %v4_v0 = vld [vmem:[%s28_s0] ss:$0 sm:$0xff] }
   0x2   :  { %5 = vst [vmem:[%s29_s1] sm:$0xff] %v4_v0  ;;  %8 = vst [vmem:[%s29_s1 + $0x8] sm:$0xff] %v4_v0 }

// kernel: tile.29
= control target key start
LH: loop header
LB: loop body
LE: loop exit
PB: predicated region body
PF: predicated region fallthrough
CT: control target
= control target key end

     0   :  { %s133_s10 = smov 120   ;;  %s134_s11 = smov 104   ;;  %vm3_vm0 = vcmask 64512   ;;  %vm9_vm1 = vcmask 1048512   ;;  %vm15_vm2 = vcmask 982912   ;;  %vm21_vm3 = vcmask 917312   ;;  %s209_s0 = inlined_call_operand.vmem [shape: f32[16,8], index: 0, kind: input, shape index: {}]   ;;  %s210_s1 = inlined_call_operand.vmem [shape: f32[1,128], index: 1, kind: output, shape index: {}]  }
   0x1   :  { %v103_v0 = vld [vmem:[%s209_s0 + $0xf] sm:$0x1]   ;;  %v105_v1 = vld [vmem:[%s209_s0 + $0xd] sm:$0x1]   ;;  %v104_v2 = vld [vmem:[%s209_s0 + $0xe] sm:$0x1]  }
   0x2   :  { %7 = vrot.lane.b32.xlu0 %v103_v0, %s133_s10  ;;  %19 = vrot.lane.b32.xlu1 %v105_v1, %s134_s11  ;;  %v106_v3 = vld [vmem:[%s209_s0 + $0xc] sm:$0x1]   ;;  %s135_s16 = smov 112   ;;  %s136_s17 = smov 96   ;;  %v107_v4 = vld [vmem:[%s209_s0 + $0xb] sm:$0x1]  }
   0x3   :  { %v108_v5 = vld [vmem:[%s209_s0 + $0xa] sm:$0x1]   ;;  %v2_v6 = vld [vmem:[%s209_s0] sm:$0x1]   ;;  %s137_s24 = smov 88   ;;  %s138_s25 = smov 80  }
   0x4   :  { %4 = vst.msk [vmem:[#allocation0] sm:$0x1] %vm3_vm0, %v2_v6   ;;  %v109_v7 = vld [vmem:[%s209_s0 + $0x9] sm:$0x1]   ;;  %v110_v8 = vld [vmem:[%s209_s0 + $0x8] sm:$0x1]  }
   0x5   :  { %s139_s30 = smov 72   ;;  %s140_s2 = smov 64   ;;  %v111_v9 = vld [vmem:[%s209_s0 + $0x7] sm:$0x1]   ;;  %v112_v10 = vld [vmem:[%s209_s0 + $0x6] sm:$0x1]  }
   0x6   :  { %13 = vrot.lane.b32.xlu0 %v104_v2, %s135_s16  ;;  %25 = vrot.lane.b32.xlu1 %v106_v3, %s136_s17  ;;  %s141_s7 = smov 56   ;;  %s142_s8 = smov 48   ;;  %v113_v11 = vld [vmem:[%s209_s0 + $0x5] sm:$0x1]   ;;  %v114_v12 = vld [vmem:[%s209_s0 + $0x4] sm:$0x1]  }
   0x7   :  { %s143_s13 = smov 40   ;;  %s144_s14 = smov 32   ;;  %v115_v13 = vld [vmem:[%s209_s0 + $0x3] sm:$0x1]   ;;  %v116_v14 = vld [vmem:[%s209_s0 + $0x2] sm:$0x1]  }
   0x8   :  { %s145_s19 = smov 24   ;;  %s146_s20 = smov 16   ;;  %v117_v15 = vld [vmem:[%s209_s0 + $0x1] sm:$0x1]   ;;  %vm27_vm4 = vcmask 851712   ;;  %vm33_vm5 = vcmask 786112  }
   0x9   :  { %s147_s0 = smov 8   ;;  %vm39_vm6 = vcmask 720512   ;;  %vm45_vm7 = vcmask 654912   ;;  %vm51_vm8 = vcmask 589312   ;;  %vm57_vm9 = vcmask 523712  }
   0xa   :  { %31 = vrot.lane.b32.xlu0 %v107_v4, %s137_s24  ;;  %37 = vrot.lane.b32.xlu1 %v108_v5, %s138_s25  ;;  %vm63_vm10 = vcmask 458112   ;;  %vm69_vm11 = vcmask 392512   ;;  %vm75_vm12 = vcmask 326912   ;;  %vm81_vm13 = vcmask 261312  }
   0xb   :  { %vm87_vm14 = vcmask 195712   ;;  %vm93_vm15 = vcmask 130112  }
   0xe   :  { %43 = vrot.lane.b32.xlu0 %v109_v7, %s139_s30  ;;  %49 = vrot.lane.b32.xlu1 %v110_v8, %s140_s2 }
  0x12   :  { %55 = vrot.lane.b32.xlu0 %v111_v9, %s141_s7  ;;  %61 = vrot.lane.b32.xlu1 %v112_v10, %s142_s8 }
  0x16   :  { %67 = vrot.lane.b32.xlu0 %v113_v11, %s143_s13  ;;  %73 = vrot.lane.b32.xlu1 %v114_v12, %s144_s14 }
  0x1a   :  { %79 = vrot.lane.b32.xlu0 %v115_v13, %s145_s19  ;;  %85 = vrot.lane.b32.xlu1 %v116_v14, %s146_s20 }
  0x1e   :  { %91 = vrot.lane.b32.xlu0 %v117_v15, %s147_s0 }
  0x74   :  { %v8_v16 = vpop.permute.xlu0 %7   ;;  %v20_v17 = vpop.permute.xlu1 %19  }
  0x75   :  { %10 = vst.msk [vmem:[#allocation0] sm:$0x1] %vm9_vm1, %v8_v16  }
  0x78   :  { %v14_v18 = vpop.permute.xlu0 %13   ;;  %v26_v19 = vpop.permute.xlu1 %25  }
  0x79   :  { %16 = vst.msk [vmem:[#allocation0] sm:$0x1] %vm15_vm2, %v14_v18  }
  0x7a   :  { %22 = vst.msk [vmem:[#allocation0] sm:$0x1] %vm21_vm3, %v20_v17  }
  0x7b   :  { %28 = vst.msk [vmem:[#allocation0] sm:$0x1] %vm27_vm4, %v26_v19  }
  0x7c   :  { %v32_v20 = vpop.permute.xlu0 %31   ;;  %v38_v21 = vpop.permute.xlu1 %37  }
  0x7d   :  { %34 = vst.msk [vmem:[#allocation0] sm:$0x1] %vm33_vm5, %v32_v20  }
  0x7e   :  { %40 = vst.msk [vmem:[#allocation0] sm:$0x1] %vm39_vm6, %v38_v21  }
  0x80   :  { %v44_v22 = vpop.permute.xlu0 %43   ;;  %v50_v23 = vpop.permute.xlu1 %49  }
  0x81   :  { %46 = vst.msk [vmem:[#allocation0] sm:$0x1] %vm45_vm7, %v44_v22  }
  0x82   :  { %52 = vst.msk [vmem:[#allocation0] sm:$0x1] %vm51_vm8, %v50_v23  }
  0x84   :  { %v56_v24 = vpop.permute.xlu0 %55   ;;  %v62_v25 = vpop.permute.xlu1 %61  }
  0x85   :  { %58 = vst.msk [vmem:[#allocation0] sm:$0x1] %vm57_vm9, %v56_v24  }
  0x86   :  { %64 = vst.msk [vmem:[#allocation0] sm:$0x1] %vm63_vm10, %v62_v25  }
  0x88   :  { %v68_v26 = vpop.permute.xlu0 %67   ;;  %v74_v27 = vpop.permute.xlu1 %73  }
  0x89   :  { %70 = vst.msk [vmem:[#allocation0] sm:$0x1] %vm69_vm11, %v68_v26  }
  0x8a   :  { %76 = vst.msk [vmem:[#allocation0] sm:$0x1] %vm75_vm12, %v74_v27  }
  0x8c   :  { %v80_v28 = vpop.permute.xlu0 %79   ;;  %v86_v29 = vpop.permute.xlu1 %85  }
  0x8d   :  { %82 = vst.msk [vmem:[#allocation0] sm:$0x1] %vm81_vm13, %v80_v28  }
  0x8e   :  { %88 = vst.msk [vmem:[#allocation0] sm:$0x1] %vm87_vm14, %v86_v29  }
  0x90   :  { %v92_v30 = vpop.permute.xlu0 %91  }
  0x91   :  { %94 = vst.msk [vmem:[#allocation0] sm:$0x1] %vm93_vm15, %v92_v30  }
  0x98   :  { %v99_v31 = vld [vmem:[#allocation0] sm:$0x1] }
  0x99   :  { %102 = vst [vmem:[%s210_s1] sm:$0x1] %v99_v31 }

// kernel: double_conv.3
= control target key start
LH: loop header
LB: loop body
LE: loop exit
PB: predicated region body
PF: predicated region fallthrough
CT: control target
= control target key end

     0   :  { %s1378_s21 = smov 0   ;;  %s1380_s22 = smov 0   ;;  %s1669_s0 = inlined_call_operand.vmem [shape: f32[2,16,64], index: 0, kind: input, shape index: {}, may-alias: {0,1,2}]   ;;  %s1670_s1 = inlined_call_operand.vmem [shape: f32[2,16,64], index: 1, kind: input, shape index: {}, may-alias: {0,1,2}]   ;;  %s1671_s2 = inlined_call_operand.vmem [shape: f32[2,16,64], index: 2, kind: input, shape index: {}, may-alias: {0,1,2}]   ;;  %s1672_s3 = inlined_call_operand.vmem [shape: f32[3,64,128], index: 3, kind: input, shape index: {}]   ;;  %s1673_s4 = inlined_call_operand.vmem [shape: f32[2,16,128], index: 4, kind: output, shape index: {0}]   ;;  %s1674_s5 = inlined_call_operand.vmem [shape: f32[2,2,1,128], index: 5, kind: output, shape index: {1}]   ;;  %s1675_s6 = inlined_call_operand.vmem [shape: f32[2,2,1,128], index: 6, kind: output, shape index: {2}]  }
   0x1   :  { %s1382_s23 = smov 0   ;;  %s1384_s24 = smov 0  }
   0x2   :  { %s1386_s25 = smov 0  }
   0x3 LB: > { %s26_s26 = sadd.s32 1, %s1327_s23  ;;  %s29_s27 = sadd.s32 1, %s1331_s24  ;;  %s1335_s25 = sphi %s1386_s25, %s17_s25   ;;  %s1331_s24 = sphi %s1384_s24, %s1680_s24   ;;  %s1327_s23 = sphi %s1382_s23, %s1679_s23   ;;  %s1323_s22 = sphi %s1380_s22, %s1678_s22   ;;  %s1319_s21 = sphi %s1378_s21, %s1677_s21  }
   0x4   : > { %p27_p0 = scmp.ge.s32.totalorder %s26_s26, 2  ;;  %p1064_p1 = scmp.ge.s32.totalorder %s1335_s25, 1 }
   0x5   : > { %p294_p2 = scmp.lt.s32.totalorder %s1335_s25, 5 }
   0x6   : > { %s1682_s26 = smov (%p27_p0, %s26_s26), 0  ;;  %s1684_s27 = smov (!%p27_p0, %s29_s27), %s1331_s24 }
   0x7   : > { %p295_p3 = pnand %p1064_p1, %p294_p2  ;;  %p31_p4 = scmp.ge.s32.totalorder %s1684_s27, 2 }
   0x8   : > { %s1065_s30 = sadd.s32 (!%p295_p3), 4294967295, %s1319_s21  ;;  %p369_p6 = scmp.lt.s32.totalorder (!%p295_p3), %s1323_s22, 1 }
   0x9   : > { %s1686_s27 = smov (%p31_p4, %s1684_s27), 0  ;;  %298 = sbr.rel (%p295_p3) target bundleno = 700 (0x2bc), region = 36 }
   0xa   : > { %p367_p5 = scmp.gt.s32.totalorder (!%p295_p3), %s1065_s30, 0  ;;  %p1066_p7 = scmp.lt.s32.totalorder (!%p295_p3), %s1065_s30, 1 }
   0xb   : > { %p382_p8 = scmp.lt.s32.totalorder (!%p295_p3), %s1319_s21, 1  ;;  %s388_s7 = sadd.s32 (!%p295_p3), 1, %s1319_s21 }
   0xc   : > { %p1467_p9 = scmp.lt.s32.totalorder (!%p295_p3), %s388_s7, 1  ;;  %p1103_p10 = scmp.le.s32.totalorder (!%p295_p3), %s1319_s21, 0 }
   0xe   : > { %v1091_v0 = vld [vmem:[%s1672_s3 + $0x78] sm:$0xff]  ;;  %v1337_v1 = vmov 0.0   ;;  %v1090_v2 = vld [vmem:[%s1672_s3 + $0x70] sm:$0xff]  ;;  %v1089_v5 = vld [vmem:[%s1672_s3 + $0x68] sm:$0xff]  ;;  %s368_s17 = scalar_select %p367_p5, %s1065_s30, 0  ;;  %vm1338_vm0 = vmmov 0  }
   0xf   : > { %1156 = vmatprep.subr.mxu0 %v1337_v1  ;;  %1175 = vmatprep.subr.mxu1 %v1337_v1  ;;  %v1424_v3 = vld [vmem:[%s1672_s3 + $0x38] sm:$0xff]  ;;  %v1431_v4 = vld [vmem:[%s1672_s3 + $0x30] sm:$0xff]  ;;  %v1442_v6 = vld [vmem:[%s1672_s3 + $0x28] sm:$0xff]  ;;  %s1688_s22 = smov (!%p369_p6, %s1323_s22), 1  ;;  %s1692_s7 = smov (!%p1467_p9, %s388_s7), 1  ;;  %vm451_vm1 = vcmask 523264  }
  0x10   : > { %1157 = vmatpush3.msra.mxu0 %v1091_v0  ;;  %1176 = vmatpush3.msra.mxu1 %v1424_v3  ;;  %v1088_v7 = vld [vmem:[%s1672_s3 + $0x60] sm:$0xff]  ;;  %s1690_s17 = smov (!%p1066_p7, %s368_s17), 1  ;;  %s1458_s29 = sshll.u32 %s1688_s22, 1  ;;  %v1087_v9 = vld [vmem:[%s1672_s3 + $0x58] sm:$0xff]  ;;  %v1086_v11 = vld [vmem:[%s1672_s3 + $0x50] sm:$0xff] }
  0x11   : > { %1158 = vmatprep.subr.mxu0 %v1337_v1  ;;  %1177 = vmatprep.subr.mxu1 %v1337_v1  ;;  %v1454_v8 = vld [vmem:[%s1672_s3 + $0x20] sm:$0xff]  ;;  %s374_s10 = sadd.s32 %s1690_s17, %s1458_s29  ;;  %v1475_v10 = vld [vmem:[%s1672_s3 + $0x18] sm:$0xff]  ;;  %v1496_v12 = vld [vmem:[%s1672_s3 + $0x10] sm:$0xff]  ;;  %s1694_s7 = smov (!%p1467_p9, %s1692_s7), 1 }
  0x12   : > { %1159 = vmatpush3.msra.mxu0 %v1090_v2  ;;  %1178 = vmatpush3.msra.mxu1 %v1431_v4  ;;  %s1477_s12 = sshll.u32 %s374_s10, 3  ;;  %v1085_v13 = vld [vmem:[%s1672_s3 + $0x48] sm:$0xff]  ;;  %v1084_v15 = vld [vmem:[%s1672_s3 + $0x40] sm:$0xff]  ;;  %v1539_v17 = vld [vmem:[%s1672_s3 + $0xb8] sm:$0xff]  ;;  %s396_s30 = sadd.s32 %s1458_s29, %s1694_s7 }
  0x13   : > { %1160 = vmatprep.subr.mxu0 %v1337_v1  ;;  %1179 = vmatprep.subr.mxu1 %v1337_v1  ;;  %s376_s17 = scalar_lea.vmem %s1669_s0, %s1477_s12  ;;  %v1512_v14 = vld [vmem:[%s1672_s3 + $0x8] sm:$0xff]  ;;  %v1545_v18 = vld [vmem:[%s1672_s3] sm:$0xff]  ;;  %v1558_v19 = vld [vmem:[%s1672_s3 + $0xb0] sm:$0xff]  ;;  %s1079_s10 = sshll.u32 %s396_s30, 3 }
  0x14   : > { %1161 = vmatpush3.msra.mxu0 %v1089_v5  ;;  %1180 = vmatpush3.msra.mxu1 %v1442_v6  ;;  %s383_s18 = scalar_select %p382_p8, %s1319_s21, 1  ;;  %v1573_v20 = vld [vmem:[%s1672_s3 + $0xa8] sm:$0xff]  ;;  %v1581_v21 = vld [vmem:[%s1672_s3 + $0xa0] sm:$0xff]  ;;  %v1590_v22 = vld [vmem:[%s1672_s3 + $0x98] sm:$0xff] }
  0x15   : > { %1162 = vmatprep.subr.mxu0 %v1337_v1  ;;  %1181 = vmatprep.subr.mxu1 %v1337_v1  ;;  %s1565_s15 = scalar_lea.vmem %s1671_s2, %s1079_s10  ;;  %v1597_v23 = vld [vmem:[%s1672_s3 + $0x90] sm:$0xff]  ;;  %v1604_v24 = vld [vmem:[%s1672_s3 + $0x88] sm:$0xff]  ;;  %v1611_v26 = vld [vmem:[%s1672_s3 + $0x80] sm:$0xff] }
  0x16   : > { %1163 = vmatpush3.msra.mxu0 %v1088_v7  ;;  %1182 = vmatpush3.msra.mxu1 %v1454_v8  ;;  %s1506_s9 = sadd.s32 %s1458_s29, %s383_s18 }
  0x17   : > { %1164 = vmatprep.subr.mxu0 %v1337_v1  ;;  %1183 = vmatprep.subr.mxu1 %v1337_v1  ;;  %s1074_s14 = sshll.u32 %s1506_s9, 3  ;;  %s416_s18 = scalar_lea.vmem %s1674_s5, %s1506_s9 }
  0x18   : > { %1165 = vmatpush3.msra.mxu0 %v1087_v9  ;;  %1172 = vmatprep.mubr.msk.f32.mxu0 %vm1338_vm0, %v1337_v1  ;;  %s387_s28 = scalar_lea.vmem %s1670_s1, %s1074_s14  ;;  %s1530_s22 = scalar_lea.vmem %s1673_s4, %s1074_s14 }
  0x19   : > { %1166 = vmatprep.subr.mxu0 %v1337_v1  ;;  %1184 = vmatpush3.msra.mxu1 %v1475_v10  ;;  %v424_v16 = vld [vmem:[%s387_s28] sm:$0xff]  ;;  %s423_s20 = scalar_lea.vmem %s1675_s6, %s1506_s9 }
  0x1a   : > { %1167 = vmatpush3.msra.mxu0 %v1086_v11  ;;  %1185 = vmatprep.subr.mxu1 %v1337_v1  ;;  %v600_v25 = vrot.slane %v424_v16, 1 }
  0x1b   : > { %1168 = vmatprep.subr.mxu0 %v1337_v1  ;;  %1186 = vmatpush3.msra.mxu1 %v1496_v12 }
  0x1c   : > { %1169 = vmatpush3.msra.mxu0 %v1085_v13  ;;  %1187 = vmatprep.subr.mxu1 %v1337_v1 }
  0x1d   : > { %1170 = vmatprep.subr.mxu0 %v1337_v1  ;;  %1188 = vmatpush3.msra.mxu1 %v1512_v14 }
  0x1e   : > { %1171 = vmatpush3.msra.mxu0 %v1084_v15  ;;  %1189 = vmatprep.subr.mxu1 %v1337_v1 }
  0x1f   : > { %1173 = vmatmul.mubr.msk.f32.vlgmr.msra.gmra.mxu0 %vm451_vm1, %v424_v16  ;;  %1194 = vmatprep.subr.mxu0 %v1337_v1 }
  0x20   : > { %1195 = vmatpush3.msra.mxu0 %v1539_v17  ;;  %1190 = vmatpush3.msra.mxu1 %v1545_v18 }
  0x21   : > { %1196 = vmatprep.subr.mxu0 %v1337_v1  ;;  %1191 = vmatprep.mubr.msk.f32.mxu1 %vm1338_vm0, %v1337_v1 }
  0x22   : > { %1197 = vmatpush3.msra.mxu0 %v1558_v19  ;;  %1192 = vmatmul.mubr.msk.f32.vlgmr.msra.gmra.mxu1 %vm451_vm1, %v424_v16 }
  0x23   : > { %1198 = vmatprep.subr.mxu0 %v1337_v1  ;;  %1210 = vmatprep.mubr.msk.f32.mxu0 %vm1338_vm0, %v1337_v1 }
  0x24   : > { %1199 = vmatpush3.msra.mxu0 %v1573_v20 }
  0x25   : > { %1200 = vmatprep.subr.mxu0 %v1337_v1 }
  0x26   : > { %1201 = vmatpush3.msra.mxu0 %v1581_v21 }
  0x27   : > { %1202 = vmatprep.subr.mxu0 %v1337_v1 }
  0x28   : > { %1203 = vmatpush3.msra.mxu0 %v1590_v22 }
  0x29   : > { %1204 = vmatprep.subr.mxu0 %v1337_v1 }
  0x2a   : > { %1205 = vmatpush3.msra.mxu0 %v1597_v23 }
  0x2b   : > { %1206 = vmatprep.subr.mxu0 %v1337_v1 }
  0x2c   : > { %1207 = vmatpush3.msra.mxu0 %v1604_v24 }
  0x2d   : > { %1208 = vmatprep.subr.mxu0 %v1337_v1 }
  0x2e   : > { %1209 = vmatpush3.msra.mxu0 %v1611_v26 }
  0x2f   : > { %1211 = vmatmul.mubr.msk.f32.vlgmr.msra.gmra.mxu0 %vm451_vm1, %v600_v25 }
  0xdf   : > { %v521_v27 = vpop.f32.mrf.mxu0 }
  0xe0   : > { %525 = vst [vmem:[#allocation2] sm:$0xff] %v521_v27 }
  0xe1   : > { %v1174_v28 = vpop.f32.mrf.mxu0 }
  0xe2   : > { %v593_v29 = vpop.f32.mrf.mxu1 }
  0xe4   : > { %v1193_v30 = vpop.f32.mrf.mxu1 }
  0xe7   : > { %v526_v31 = vld [vmem:[#allocation2 + $0x1] sm:$0x7f] }
  0xe8   : > { %v597_v32 = vadd.f32 %v593_v29, %v526_v31 }
  0xea   : > { %598 = vst [vmem:[#allocation2 + $0x1] sm:$0x7f] %v597_v32 }
  0xef   : > { %v669_v33 = vpop.f32.mrf.mxu0 }
  0xf0   : > { %678 = sbr.rel (%p1103_p10) target bundleno = 458 (0x1ca), region = 40 }
  0xf1   : > { %v599_v34 = vld [vmem:[#allocation2] sm:$0x7f]  ;;  %v1212_v35 = vpop.f32.mrf.mxu0 }
  0xf2   : > { %v673_v36 = vadd.f32 %v669_v33, %v599_v34 }
  0xf4   : > { %674 = vst [vmem:[#allocation2] sm:$0x7f] %v673_v36 }
  0xf5   : > { %v1339_v37 = vmov 0.0   ;;  %vm1340_vm2 = vmmov 0   ;;  %v680_v38 = vld [vmem:[%s376_s17 + $0x7] sm:$0x1] }
  0xf6   : > { %1213 = vmatprep.subr.mxu0 %v1339_v37  ;;  %1229 = vmatprep.mubr.msk.f32.mxu0 %vm1340_vm2, %v1339_v37 }
  0xf7   : > { %1214 = vmatpush3.msra.mxu0 %v1424_v3 }
  0xf8   : > { %1215 = vmatprep.subr.mxu0 %v1339_v37 }
  0xf9   : > { %1216 = vmatpush3.msra.mxu0 %v1431_v4 }
  0xfa   : > { %1217 = vmatprep.subr.mxu0 %v1339_v37 }
  0xfb   : > { %1218 = vmatpush3.msra.mxu0 %v1442_v6  ;;  %v679_v39 = vld [vmem:[#allocation2] sm:$0x1] }
  0xfc   : > { %1219 = vmatprep.subr.mxu0 %v1339_v37 }
  0xfd   : > { %1220 = vmatpush3.msra.mxu0 %v1454_v8 }
  0xfe   : > { %1221 = vmatprep.subr.mxu0 %v1339_v37 }
  0xff   : > { %1222 = vmatpush3.msra.mxu0 %v1475_v10 }
 0x100   : > { %1223 = vmatprep.subr.mxu0 %v1339_v37 }
 0x101   : > { %1224 = vmatpush3.msra.mxu0 %v1496_v12 }
 0x102   : > { %1225 = vmatprep.subr.mxu0 %v1339_v37 }
 0x103   : > { %1226 = vmatpush3.msra.mxu0 %v1512_v14 }
 0x104   : > { %1227 = vmatprep.subr.mxu0 %v1339_v37 }
 0x105   : > { %1228 = vmatpush3.msra.mxu0 %v1545_v18 }
 0x106   : > { %1230 = vmatmul.mubr.msk.f32.vlgmr.msra.gmra.mxu0 %vm451_vm1, %v680_v38 }
 0x1c6   : > { %v750_v40 = vpop.f32.mrf.mxu0 }
 0x1c7   : > { %v754_v41 = vadd.f32 %v750_v40, %v679_v39 }
 0x1c8   : > { %v1231_v42 = vpop.f32.mrf.mxu0 }
 0x1c9   : > { %755 = vst [vmem:[#allocation2] sm:$0x1] %v754_v41 }
 0x1ca PF: > { %p1105_p11 = scmp.ge.s32.totalorder %s1319_s21, 1 }
 0x1cc   : > { %759 = sbr.rel (%p1105_p11) target bundleno = 678 (0x2a6), region = 44 }
 0x1d1   : > { %v1341_v43 = vmov 0.0   ;;  %vm1342_vm3 = vmmov 0   ;;  %v761_v44 = vld [vmem:[%s1565_s15] sm:$0x1]  ;;  %v760_v45 = vld [vmem:[#allocation2 + $0x7] sm:$0x1] }
 0x1d2   : > { %1232 = vmatprep.subr.mxu0 %v1341_v43  ;;  %1248 = vmatprep.mubr.msk.f32.mxu0 %vm1342_vm3, %v1341_v43 }
 0x1d3   : > { %1233 = vmatpush3.msra.mxu0 %v1539_v17 }
 0x1d4   : > { %1234 = vmatprep.subr.mxu0 %v1341_v43 }
 0x1d5   : > { %1235 = vmatpush3.msra.mxu0 %v1558_v19 }
 0x1d6   : > { %1236 = vmatprep.subr.mxu0 %v1341_v43 }
 0x1d7   : > { %1237 = vmatpush3.msra.mxu0 %v1573_v20 }
 0x1d8   : > { %1238 = vmatprep.subr.mxu0 %v1341_v43 }
 0x1d9   : > { %1239 = vmatpush3.msra.mxu0 %v1581_v21 }
 0x1da   : > { %1240 = vmatprep.subr.mxu0 %v1341_v43 }
 0x1db   : > { %1241 = vmatpush3.msra.mxu0 %v1590_v22 }
 0x1dc   : > { %1242 = vmatprep.subr.mxu0 %v1341_v43 }
 0x1dd   : > { %1243 = vmatpush3.msra.mxu0 %v1597_v23 }
 0x1de   : > { %1244 = vmatprep.subr.mxu0 %v1341_v43 }
 0x1df   : > { %1245 = vmatpush3.msra.mxu0 %v1604_v24 }
 0x1e0   : > { %1246 = vmatprep.subr.mxu0 %v1341_v43 }
 0x1e1   : > { %1247 = vmatpush3.msra.mxu0 %v1611_v26 }
 0x1e2   : > { %1249 = vmatmul.mubr.msk.f32.vlgmr.msra.gmra.mxu0 %vm451_vm1, %v761_v44 }
 0x2a2   : > { %v831_v46 = vpop.f32.mrf.mxu0 }
 0x2a3   : > { %v835_v47 = vadd.f32 %v831_v46, %v760_v45 }
 0x2a4   : > { %v1250_v48 = vpop.f32.mrf.mxu0 }
 0x2a5   : > { %836 = vst [vmem:[#allocation2 + $0x7] sm:$0x1] %v835_v47 }
 0x2a6 PF:  {}
 0x2ac   : > { %v837_v49 = vld [vmem:[#allocation2] sm:$0xff] }
 0x2ad   : > { %v838_v50 = vrot.slane %v837_v49, 4  ;;  %853 = vst [vmem:[%s1530_s22] sm:$0xff] %v837_v49  ;;  %v845_v51 = vmul.f32 %v837_v49, %v837_v49 }
 0x2af   : > { %v839_v52 = vadd.f32 %v838_v50, %v837_v49  ;;  %v846_v53 = vrot.slane %v845_v51, 4 }
 0x2b1   : > { %v840_v54 = vrot.slane %v839_v52, 2  ;;  %v847_v55 = vadd.f32 %v846_v53, %v845_v51 }
 0x2b3   : > { %v841_v56 = vadd.f32 %v840_v54, %v839_v52  ;;  %v848_v57 = vrot.slane %v847_v55, 2 }
 0x2b5   : > { %v842_v58 = vrot.slane %v841_v56, 1  ;;  %v849_v59 = vadd.f32 %v848_v57, %v847_v55 }
 0x2b7   : > { %v843_v60 = vadd.f32 %v842_v58, %v841_v56  ;;  %v850_v61 = vrot.slane %v849_v59, 1 }
 0x2b9   : > { %844 = vst [vmem:[%s416_s18] sm:$0x1] %v843_v60  ;;  %v851_v62 = vadd.f32 %v850_v61, %v849_v59 }
 0x2bb   : > { %852 = vst [vmem:[%s423_s20] sm:$0x1] %v851_v62 }
 0x2bc PF: > { %s17_s25 = sadd.s32 1, %s1335_s25   ;;  %s1677_s21 = smov %s1327_s23 }
 0x2bd   : > { %p14_p12 = scmp.ge.s32.totalorder %s17_s25, 6   ;;  %s1678_s22 = smov %s1331_s24 }
 0x2be   : > { %s1679_s23 = smov %s1682_s26  ;;  %s1680_s24 = smov %s1686_s27 }
 0x2bf   :  { %16 = sbr.rel (!%p14_p12) target bundleno = 3 (0x3), region = 106 }

// kernel: double_conv.4
= control target key start
LH: loop header
LB: loop body
LE: loop exit
PB: predicated region body
PF: predicated region fallthrough
CT: control target
= control target key end

     0   :  { %s1616_s27 = smov 0   ;;  %s1618_s28 = smov 0   ;;  %s2085_s0 = inlined_call_operand.vmem [shape: f32[1,128], index: 0, kind: input, shape index: {}]   ;;  %s2086_s1 = inlined_call_operand.vmem [shape: f32[1,128], index: 1, kind: input, shape index: {}]   ;;  %s2087_s2 = inlined_call_operand.vmem [shape: f32[2,16,128], index: 2, kind: input, shape index: {}, may-alias: {2,3,4}]   ;;  %s2088_s3 = inlined_call_operand.vmem [shape: f32[2,16,128], index: 3, kind: input, shape index: {}, may-alias: {2,3,4}]   ;;  %s2089_s4 = inlined_call_operand.vmem [shape: f32[2,16,128], index: 4, kind: input, shape index: {}, may-alias: {2,3,4}]   ;;  %s2090_s5 = inlined_call_operand.vmem [shape: f32[3,128,128], index: 5, kind: input, shape index: {}]   ;;  %s2091_s6 = inlined_call_operand.vmem [shape: f32[2,16,128], index: 6, kind: output, shape index: {0}]   ;;  %s2092_s7 = inlined_call_operand.vmem [shape: f32[2,2,1,128], index: 7, kind: output, shape index: {1}]   ;;  %s2093_s8 = inlined_call_operand.vmem [shape: f32[2,2,1,128], index: 8, kind: output, shape index: {2}]  }
   0x1   :  { %s1620_s29 = smov 0   ;;  %s1622_s30 = smov 0  }
   0x2   :  { %s1624_s9 = smov 0  }
   0x3 LB: > { %s28_s10 = sadd.s32 1, %s1555_s29  ;;  %s31_s11 = sadd.s32 1, %s1559_s30  ;;  %s1563_s9 = sphi %s1624_s9, %s19_s9   ;;  %s1559_s30 = sphi %s1622_s30, %s2101_s30   ;;  %s1555_s29 = sphi %s1620_s29, %s2100_s29   ;;  %s1551_s28 = sphi %s1618_s28, %s2099_s28   ;;  %s1547_s27 = sphi %s1616_s27, %s2098_s27  }
   0x4   : > { %p29_p0 = scmp.ge.s32.totalorder %s28_s10, 2  ;;  %p1159_p1 = scmp.ge.s32.totalorder %s1563_s9, 1 }
   0x5   : > { %p344_p2 = scmp.lt.s32.totalorder %s1563_s9, 5 }
   0x6   : > { %s2103_s10 = smov (%p29_p0, %s28_s10), 0  ;;  %s2105_s11 = smov (!%p29_p0, %s31_s11), %s1559_s30 }
   0x7   : > { %p345_p3 = pnand %p1159_p1, %p344_p2  ;;  %p33_p4 = scmp.ge.s32.totalorder %s2105_s11, 2 }
   0x8   : > { %s1160_s14 = sadd.s32 (!%p345_p3), 4294967295, %s1547_s27  ;;  %p423_p6 = scmp.lt.s32.totalorder (!%p345_p3), %s1551_s28, 1 }
   0x9   : > { %s2107_s11 = smov (%p33_p4, %s2105_s11), 0  ;;  %348 = sbr.rel (%p345_p3) target bundleno = 762 (0x2fa), region = 44 }
   0xa   : > { %2094 = sst [smem:[#allocation3_spill]] %s2107_s11  ;;  %p421_p5 = scmp.gt.s32.totalorder (!%p345_p3), %s1160_s14, 0 }
   0xb   : > { %p1161_p7 = scmp.lt.s32.totalorder (!%p345_p3), %s1160_s14, 1  ;;  %p436_p8 = scmp.lt.s32.totalorder (!%p345_p3), %s1547_s27, 1 }
   0xc   : > { %s442_s17 = sadd.s32 (!%p345_p3), 1, %s1547_s27  ;;  %p1213_p10 = scmp.le.s32.totalorder (!%p345_p3), %s1547_s27, 0 }
   0xd   : > { %p1710_p9 = scmp.lt.s32.totalorder (!%p345_p3), %s442_s17, 1 }
   0xe   : > { %v1196_v0 = vld [vmem:[%s2090_s5 + $0xf8] sm:$0xff]  ;;  %v1565_v1 = vmov 0.0   ;;  %v1195_v2 = vld [vmem:[%s2090_s5 + $0xf0] sm:$0xff]  ;;  %v1194_v5 = vld [vmem:[%s2090_s5 + $0xe8] sm:$0xff]  ;;  %s422_s25 = scalar_select %p421_p5, %s1160_s14, 0  ;;  %vm1566_vm0 = vmmov 0  }
   0xf   : > { %1304 = vmatprep.subr.mxu0 %v1565_v1  ;;  %1339 = vmatprep.subr.mxu1 %v1565_v1  ;;  %v1662_v3 = vld [vmem:[%s2090_s5 + $0x78] sm:$0xff]  ;;  %v1669_v4 = vld [vmem:[%s2090_s5 + $0x70] sm:$0xff]  ;;  %v1680_v6 = vld [vmem:[%s2090_s5 + $0x68] sm:$0xff]  ;;  %s2109_s28 = smov (!%p423_p6, %s1551_s28), 1  ;;  %s2113_s17 = smov (!%p1710_p9, %s442_s17), 1 }
  0x10   : > { %1305 = vmatpush3.msra.mxu0 %v1196_v0  ;;  %1340 = vmatpush3.msra.mxu1 %v1662_v3  ;;  %v1193_v7 = vld [vmem:[%s2090_s5 + $0xe0] sm:$0xff]  ;;  %s2111_s25 = smov (!%p1161_p7, %s422_s25), 1  ;;  %s1696_s16 = sshll.u32 %s2109_s28, 1  ;;  %v1192_v9 = vld [vmem:[%s2090_s5 + $0xd8] sm:$0xff]  ;;  %v1191_v11 = vld [vmem:[%s2090_s5 + $0xd0] sm:$0xff] }
  0x11   : > { %1306 = vmatprep.subr.mxu0 %v1565_v1  ;;  %1341 = vmatprep.subr.mxu1 %v1565_v1  ;;  %v1692_v8 = vld [vmem:[%s2090_s5 + $0x60] sm:$0xff]  ;;  %v1707_v10 = vld [vmem:[%s2090_s5 + $0x58] sm:$0xff]  ;;  %s428_s21 = sadd.s32 %s2111_s25, %s1696_s16  ;;  %v1725_v12 = vld [vmem:[%s2090_s5 + $0x50] sm:$0xff]  ;;  %s2115_s17 = smov (!%p1710_p9, %s2113_s17), 1 }
  0x12   : > { %1307 = vmatpush3.msra.mxu0 %v1195_v2  ;;  %1342 = vmatpush3.msra.mxu1 %v1669_v4  ;;  %s1715_s22 = sshll.u32 %s428_s21, 3  ;;  %v1190_v13 = vld [vmem:[%s2090_s5 + $0xc8] sm:$0xff]  ;;  %v1189_v15 = vld [vmem:[%s2090_s5 + $0xc0] sm:$0xff]  ;;  %v1188_v17 = vld [vmem:[%s2090_s5 + $0xb8] sm:$0xff]  ;;  %s450_s28 = sadd.s32 %s1696_s16, %s2115_s17 }
  0x13   : > { %1308 = vmatprep.subr.mxu0 %v1565_v1  ;;  %1343 = vmatprep.subr.mxu1 %v1565_v1  ;;  %s437_s18 = scalar_select %p436_p8, %s1547_s27, 1  ;;  %v1743_v14 = vld [vmem:[%s2090_s5 + $0x48] sm:$0xff]  ;;  %v1759_v16 = vld [vmem:[%s2090_s5 + $0x40] sm:$0xff]  ;;  %v1783_v18 = vld [vmem:[%s2090_s5 + $0x38] sm:$0xff] }
  0x14   : > { %1309 = vmatpush3.msra.mxu0 %v1194_v5  ;;  %1344 = vmatpush3.msra.mxu1 %v1680_v6  ;;  %v1187_v19 = vld [vmem:[%s2090_s5 + $0xb0] sm:$0xff]  ;;  %s1174_s19 = sshll.u32 %s450_s28, 3  ;;  %v1179_v22 = vld [vmem:[%s2085_s0] ss:$0 sm:$0xff]  ;;  %v1186_v23 = vld [vmem:[%s2090_s5 + $0xa8] sm:$0xff]  ;;  %s2096_s28 = scalar_lea.vmem (!%p1213_p10), %s2087_s2, %s1715_s22 }
  0x15   : > { %1310 = vmatprep.subr.mxu0 %v1565_v1  ;;  %1345 = vmatprep.subr.mxu1 %v1565_v1  ;;  %s1749_s23 = sadd.s32 %s1696_s16, %s437_s18  ;;  %v1800_v20 = vld [vmem:[%s2090_s5 + $0x30] sm:$0xff]  ;;  %v1815_v24 = vld [vmem:[%s2090_s5 + $0x28] sm:$0xff]  ;;  %v1185_v25 = vld [vmem:[%s2090_s5 + $0xa0] sm:$0xff] }
  0x16   : > { %1311 = vmatpush3.msra.mxu0 %v1193_v7  ;;  %1346 = vmatpush3.msra.mxu1 %v1692_v8  ;;  %s1169_s13 = sshll.u32 %s1749_s23, 3  ;;  %s470_s20 = scalar_lea.vmem %s2092_s7, %s1749_s23  ;;  %v1832_v27 = vld [vmem:[%s2090_s5 + $0x20] sm:$0xff]  ;;  %v1184_v29 = vld [vmem:[%s2090_s5 + $0x98] sm:$0xff]  ;;  %v1183_v31 = vld [vmem:[%s2090_s5 + $0x90] sm:$0xff] }
  0x17   : > { %1312 = vmatprep.subr.mxu0 %v1565_v1  ;;  %1347 = vmatprep.subr.mxu1 %v1565_v1  ;;  %s441_s24 = scalar_lea.vmem %s2088_s3, %s1169_s13  ;;  %s1773_s11 = scalar_lea.vmem %s2091_s6, %s1169_s13  ;;  %v1180_v28 = vld [vmem:[%s2086_s1] ss:$0 sm:$0xff]  ;;  %v1847_v30 = vld [vmem:[%s2090_s5 + $0x18] sm:$0xff]  ;;  %v1858_v33 = vld [vmem:[%s2090_s5 + $0x10] sm:$0xff] }
  0x18   : > { %1313 = vmatpush3.msra.mxu0 %v1192_v9  ;;  %1348 = vmatpush3.msra.mxu1 %v1707_v10  ;;  %s477_s14 = scalar_lea.vmem %s2093_s8, %s1749_s23  ;;  %v478_v21 = vld [vmem:[%s441_s24] sm:$0xff]  ;;  %s1820_s24 = scalar_lea.vmem %s2089_s4, %s1174_s19  ;;  %v1182_v34 = vld [vmem:[%s2090_s5 + $0x88] sm:$0xff]  ;;  %v1883_v38 = vld [vmem:[%s2090_s5 + $0x178] sm:$0xff] }
  0x19   : > { %1314 = vmatprep.subr.mxu0 %v1565_v1  ;;  %1349 = vmatprep.subr.mxu1 %v1565_v1  ;;  %v486_v26 = vmul.f32 %v1179_v22, %v478_v21  ;;  %v1869_v35 = vld [vmem:[%s2090_s5 + $0x8] sm:$0xff]  ;;  %v1181_v36 = vld [vmem:[%s2090_s5 + $0x80] sm:$0xff]  ;;  %v1897_v40 = vld [vmem:[%s2090_s5 + $0x170] sm:$0xff] }
  0x1a   : > { %1315 = vmatpush3.msra.mxu0 %v1191_v11  ;;  %1350 = vmatpush3.msra.mxu1 %v1725_v12  ;;  %v1889_v39 = vld [vmem:[%s2090_s5] sm:$0xff]  ;;  %v1905_v41 = vld [vmem:[%s2090_s5 + $0x168] sm:$0xff]  ;;  %v1924_v43 = vld [vmem:[%s2090_s5 + $0x158] sm:$0xff] }
  0x1b   : > { %1316 = vmatprep.subr.mxu0 %v1565_v1  ;;  %1351 = vmatprep.subr.mxu1 %v1565_v1  ;;  %v494_v32 = vadd.f32 %v1180_v28, %v486_v26  ;;  %v1915_v42 = vld [vmem:[%s2090_s5 + $0x160] sm:$0xff]  ;;  %v1931_v44 = vld [vmem:[%s2090_s5 + $0x150] sm:$0xff]  ;;  %v1938_v45 = vld [vmem:[%s2090_s5 + $0x148] sm:$0xff] }
  0x1c   : > { %1317 = vmatpush3.msra.mxu0 %v1190_v13  ;;  %1352 = vmatpush3.msra.mxu1 %v1743_v14  ;;  %v1945_v46 = vld [vmem:[%s2090_s5 + $0x140] sm:$0xff]  ;;  %v1952_v47 = vld [vmem:[%s2090_s5 + $0x138] sm:$0xff]  ;;  %v1959_v48 = vld [vmem:[%s2090_s5 + $0x130] sm:$0xff] }
  0x1d   : > { %1318 = vmatprep.subr.mxu0 %v1565_v1  ;;  %1353 = vmatprep.subr.mxu1 %v1565_v1  ;;  %v1875_v37 = vmax.f32 %v494_v32, 0.0  ;;  %v1966_v49 = vld [vmem:[%s2090_s5 + $0x128] sm:$0xff]  ;;  %v1973_v50 = vld [vmem:[%s2090_s5 + $0x120] sm:$0xff]  ;;  %v1980_v51 = vld [vmem:[%s2090_s5 + $0x118] sm:$0xff] }
  0x1e   : > { %1319 = vmatpush3.msra.mxu0 %v1189_v15  ;;  %1354 = vmatpush3.msra.mxu1 %v1759_v16  ;;  %v1987_v52 = vld [vmem:[%s2090_s5 + $0x110] sm:$0xff]  ;;  %v1994_v53 = vld [vmem:[%s2090_s5 + $0x108] sm:$0xff]  ;;  %v2001_v54 = vld [vmem:[%s2090_s5 + $0x100] sm:$0xff] }
  0x1f   : > { %1320 = vmatprep.subr.mxu0 %v1565_v1  ;;  %1355 = vmatprep.subr.mxu1 %v1565_v1  ;;  %v692_v55 = vrot.slane %v1875_v37, 1 }
  0x20   : > { %1321 = vmatpush3.msra.mxu0 %v1188_v17  ;;  %1356 = vmatpush3.msra.mxu1 %v1783_v18 }
  0x21   : > { %1322 = vmatprep.subr.mxu0 %v1565_v1  ;;  %1357 = vmatprep.subr.mxu1 %v1565_v1 }
  0x22   : > { %1323 = vmatpush3.msra.mxu0 %v1187_v19  ;;  %1358 = vmatpush3.msra.mxu1 %v1800_v20 }
  0x23   : > { %1324 = vmatprep.subr.mxu0 %v1565_v1  ;;  %1359 = vmatprep.subr.mxu1 %v1565_v1 }
  0x24   : > { %1325 = vmatpush3.msra.mxu0 %v1186_v23  ;;  %1360 = vmatpush3.msra.mxu1 %v1815_v24 }
  0x25   : > { %1326 = vmatprep.subr.mxu0 %v1565_v1  ;;  %1361 = vmatprep.subr.mxu1 %v1565_v1 }
  0x26   : > { %1327 = vmatpush3.msra.mxu0 %v1185_v25  ;;  %1336 = vmatprep.mubr.msk.f32.mxu0 %vm1566_vm0, %v1565_v1 }
  0x27   : > { %1328 = vmatprep.subr.mxu0 %v1565_v1  ;;  %1362 = vmatpush3.msra.mxu1 %v1832_v27 }
  0x28   : > { %1329 = vmatpush3.msra.mxu0 %v1184_v29  ;;  %1363 = vmatprep.subr.mxu1 %v1565_v1 }
  0x29   : > { %1330 = vmatprep.subr.mxu0 %v1565_v1  ;;  %1364 = vmatpush3.msra.mxu1 %v1847_v30 }
  0x2a   : > { %1331 = vmatpush3.msra.mxu0 %v1183_v31  ;;  %1365 = vmatprep.subr.mxu1 %v1565_v1 }
  0x2b   : > { %1332 = vmatprep.subr.mxu0 %v1565_v1  ;;  %1366 = vmatpush3.msra.mxu1 %v1858_v33 }
  0x2c   : > { %1333 = vmatpush3.msra.mxu0 %v1182_v34  ;;  %1367 = vmatprep.subr.mxu1 %v1565_v1 }
  0x2d   : > { %1334 = vmatprep.subr.mxu0 %v1565_v1  ;;  %1368 = vmatpush3.msra.mxu1 %v1869_v35 }
  0x2e   : > { %1335 = vmatpush3.msra.mxu0 %v1181_v36  ;;  %1369 = vmatprep.subr.mxu1 %v1565_v1 }
  0x2f   : > { %1337 = vmatmul.mubr.f32.vlgmr.msra.gmra.mxu0 %v1875_v37  ;;  %1374 = vmatprep.subr.mxu0 %v1565_v1 }
  0x30   : > { %1375 = vmatpush3.msra.mxu0 %v1883_v38  ;;  %1370 = vmatpush3.msra.mxu1 %v1889_v39 }
  0x31   : > { %1376 = vmatprep.subr.mxu0 %v1565_v1  ;;  %1371 = vmatprep.mubr.msk.f32.mxu1 %vm1566_vm0, %v1565_v1 }
  0x32   : > { %1377 = vmatpush3.msra.mxu0 %v1897_v40  ;;  %1372 = vmatmul.mubr.f32.vlgmr.msra.gmra.mxu1 %v1875_v37 }
  0x33   : > { %1378 = vmatprep.subr.mxu0 %v1565_v1  ;;  %1406 = vmatprep.mubr.msk.f32.mxu0 %vm1566_vm0, %v1565_v1 }
  0x34   : > { %1379 = vmatpush3.msra.mxu0 %v1905_v41 }
  0x35   : > { %1380 = vmatprep.subr.mxu0 %v1565_v1 }
  0x36   : > { %1381 = vmatpush3.msra.mxu0 %v1915_v42 }
  0x37   : > { %1382 = vmatprep.subr.mxu0 %v1565_v1 }
  0x38   : > { %1383 = vmatpush3.msra.mxu0 %v1924_v43 }
  0x39   : > { %1384 = vmatprep.subr.mxu0 %v1565_v1 }
  0x3a   : > { %1385 = vmatpush3.msra.mxu0 %v1931_v44 }
  0x3b   : > { %1386 = vmatprep.subr.mxu0 %v1565_v1 }
  0x3c   : > { %1387 = vmatpush3.msra.mxu0 %v1938_v45 }
  0x3d   : > { %1388 = vmatprep.subr.mxu0 %v1565_v1 }
  0x3e   : > { %1389 = vmatpush3.msra.mxu0 %v1945_v46 }
  0x3f   : > { %1390 = vmatprep.subr.mxu0 %v1565_v1 }
  0x40   : > { %1391 = vmatpush3.msra.mxu0 %v1952_v47 }
  0x41   : > { %1392 = vmatprep.subr.mxu0 %v1565_v1 }
  0x42   : > { %1393 = vmatpush3.msra.mxu0 %v1959_v48 }
  0x43   : > { %1394 = vmatprep.subr.mxu0 %v1565_v1 }
  0x44   : > { %1395 = vmatpush3.msra.mxu0 %v1966_v49 }
  0x45   : > { %1396 = vmatprep.subr.mxu0 %v1565_v1 }
  0x46   : > { %1397 = vmatpush3.msra.mxu0 %v1973_v50 }
  0x47   : > { %1398 = vmatprep.subr.mxu0 %v1565_v1 }
  0x48   : > { %1399 = vmatpush3.msra.mxu0 %v1980_v51 }
  0x49   : > { %1400 = vmatprep.subr.mxu0 %v1565_v1 }
  0x4a   : > { %1401 = vmatpush3.msra.mxu0 %v1987_v52 }
  0x4b   : > { %1402 = vmatprep.subr.mxu0 %v1565_v1 }
  0x4c   : > { %1403 = vmatpush3.msra.mxu0 %v1994_v53 }
  0x4d   : > { %1404 = vmatprep.subr.mxu0 %v1565_v1 }
  0x4e   : > { %1405 = vmatpush3.msra.mxu0 %v2001_v54 }
  0x4f   : > { %1407 = vmatmul.mubr.f32.vlgmr.msra.gmra.mxu0 %v692_v55 }
  0xef   : > { %v612_v56 = vpop.f32.mrf.mxu0 }
  0xf0   : > { %616 = vst [vmem:[#allocation2] sm:$0xff] %v612_v56 }
  0xf1   : > { %v1338_v57 = vpop.f32.mrf.mxu0 }
  0xf2   : > { %v684_v58 = vpop.f32.mrf.mxu1 }
  0xf4   : > { %v1373_v59 = vpop.f32.mrf.mxu1 }
  0xf7   : > { %v617_v60 = vld [vmem:[#allocation2 + $0x1] sm:$0x7f] }
  0xf8   : > { %v688_v61 = vadd.f32 %v684_v58, %v617_v60 }
  0xfa   : > { %689 = vst [vmem:[#allocation2 + $0x1] sm:$0x7f] %v688_v61 }
 0x101   : > { %v690_v62 = vld [vmem:[#allocation2] sm:$0x7f] }
 0x10e   : > { %769 = sbr.rel (%p1213_p10) target bundleno = 504 (0x1f8), region = 48 }
 0x10f   : > { %v760_v63 = vpop.f32.mrf.mxu0 }
 0x110   : > { %v764_v0 = vadd.f32 %v760_v63, %v690_v62 }
 0x111   : > { %v1408_v2 = vpop.f32.mrf.mxu0 }
 0x112   : > { %765 = vst [vmem:[#allocation2] sm:$0x7f] %v764_v0 }
 0x113   : > { %v1567_v1 = vmov 0.0   ;;  %vm1568_vm1 = vmmov 0  }
 0x114   : > { %1409 = vmatprep.subr.mxu0 %v1567_v1  ;;  %1441 = vmatprep.mubr.msk.f32.mxu0 %vm1568_vm1, %v1567_v1 }
 0x115   : > { %1410 = vmatpush3.msra.mxu0 %v1662_v3  ;;  %v771_v3 = vld [vmem:[%s2096_s28 + $0x7] sm:$0x1] }
 0x116   : > { %1411 = vmatprep.subr.mxu0 %v1567_v1 }
 0x117   : > { %1412 = vmatpush3.msra.mxu0 %v1669_v4  ;;  %v772_v4 = vld [vmem:[%s2085_s0] sm:$0x1] }
 0x118   : > { %1413 = vmatprep.subr.mxu0 %v1567_v1  ;;  %v773_v5 = vmul.f32 %v772_v4, %v771_v3 }
 0x119   : > { %1414 = vmatpush3.msra.mxu0 %v1680_v6  ;;  %v774_v6 = vld [vmem:[%s2086_s1] sm:$0x1] }
 0x11a   : > { %1415 = vmatprep.subr.mxu0 %v1567_v1  ;;  %v775_v7 = vadd.f32 %v774_v6, %v773_v5  ;;  %v770_v9 = vld [vmem:[#allocation2] sm:$0x1] }
 0x11b   : > { %1416 = vmatpush3.msra.mxu0 %v1692_v8 }
 0x11c   : > { %1417 = vmatprep.subr.mxu0 %v1567_v1  ;;  %v776_v8 = vmax.f32 %v775_v7, 0.0 }
 0x11d   : > { %1418 = vmatpush3.msra.mxu0 %v1707_v10 }
 0x11e   : > { %1419 = vmatprep.subr.mxu0 %v1567_v1 }
 0x11f   : > { %1420 = vmatpush3.msra.mxu0 %v1725_v12 }
 0x120   : > { %1421 = vmatprep.subr.mxu0 %v1567_v1 }
 0x121   : > { %1422 = vmatpush3.msra.mxu0 %v1743_v14 }
 0x122   : > { %1423 = vmatprep.subr.mxu0 %v1567_v1 }
 0x123   : > { %1424 = vmatpush3.msra.mxu0 %v1759_v16 }
 0x124   : > { %1425 = vmatprep.subr.mxu0 %v1567_v1 }
 0x125   : > { %1426 = vmatpush3.msra.mxu0 %v1783_v18 }
 0x126   : > { %1427 = vmatprep.subr.mxu0 %v1567_v1 }
 0x127   : > { %1428 = vmatpush3.msra.mxu0 %v1800_v20 }
 0x128   : > { %1429 = vmatprep.subr.mxu0 %v1567_v1 }
 0x129   : > { %1430 = vmatpush3.msra.mxu0 %v1815_v24 }
 0x12a   : > { %1431 = vmatprep.subr.mxu0 %v1567_v1 }
 0x12b   : > { %1432 = vmatpush3.msra.mxu0 %v1832_v27 }
 0x12c   : > { %1433 = vmatprep.subr.mxu0 %v1567_v1 }
 0x12d   : > { %1434 = vmatpush3.msra.mxu0 %v1847_v30 }
 0x12e   : > { %1435 = vmatprep.subr.mxu0 %v1567_v1 }
 0x12f   : > { %1436 = vmatpush3.msra.mxu0 %v1858_v33 }
 0x130   : > { %1437 = vmatprep.subr.mxu0 %v1567_v1 }
 0x131   : > { %1438 = vmatpush3.msra.mxu0 %v1869_v35 }
 0x132   : > { %1439 = vmatprep.subr.mxu0 %v1567_v1 }
 0x133   : > { %1440 = vmatpush3.msra.mxu0 %v1889_v39 }
 0x134   : > { %1442 = vmatmul.mubr.f32.vlgmr.msra.gmra.mxu0 %v776_v8 }
 0x1f4   : > { %v843_v10 = vpop.f32.mrf.mxu0 }
 0x1f5   : > { %v847_v11 = vadd.f32 %v843_v10, %v770_v9 }
 0x1f6   : > { %v1443_v12 = vpop.f32.mrf.mxu0 }
 0x1f7   : > { %848 = vst [vmem:[#allocation2] sm:$0x1] %v847_v11 }
 0x1f8 PF: > { %p1214_p11 = scmp.ge.s32.totalorder %s1547_s27, 1 }
 0x1fa   : > { %852 = sbr.rel (%p1214_p11) target bundleno = 740 (0x2e4), region = 52 }
 0x1ff   : > { %v1569_v13 = vmov 0.0   ;;  %vm1570_vm2 = vmmov 0   ;;  %v854_v14 = vld [vmem:[%s1820_s24] sm:$0x1]  ;;  %v853_v20 = vld [vmem:[#allocation2 + $0x7] sm:$0x1] }
 0x200   : > { %1444 = vmatprep.subr.mxu0 %v1569_v13  ;;  %1476 = vmatprep.mubr.msk.f32.mxu0 %vm1570_vm2, %v1569_v13  ;;  %v855_v15 = vld [vmem:[%s2085_s0] sm:$0x1] }
 0x201   : > { %1445 = vmatpush3.msra.mxu0 %v1883_v38  ;;  %v856_v16 = vmul.f32 %v855_v15, %v854_v14  ;;  %v857_v17 = vld [vmem:[%s2086_s1] sm:$0x1] }
 0x202   : > { %1446 = vmatprep.subr.mxu0 %v1569_v13 }
 0x203   : > { %1447 = vmatpush3.msra.mxu0 %v1897_v40  ;;  %v858_v18 = vadd.f32 %v857_v17, %v856_v16 }
 0x204   : > { %1448 = vmatprep.subr.mxu0 %v1569_v13 }
 0x205   : > { %1449 = vmatpush3.msra.mxu0 %v1905_v41  ;;  %v859_v19 = vmax.f32 %v858_v18, 0.0 }
 0x206   : > { %1450 = vmatprep.subr.mxu0 %v1569_v13 }
 0x207   : > { %1451 = vmatpush3.msra.mxu0 %v1915_v42 }
 0x208   : > { %1452 = vmatprep.subr.mxu0 %v1569_v13 }
 0x209   : > { %1453 = vmatpush3.msra.mxu0 %v1924_v43 }
 0x20a   : > { %1454 = vmatprep.subr.mxu0 %v1569_v13 }
 0x20b   : > { %1455 = vmatpush3.msra.mxu0 %v1931_v44 }
 0x20c   : > { %1456 = vmatprep.subr.mxu0 %v1569_v13 }
 0x20d   : > { %1457 = vmatpush3.msra.mxu0 %v1938_v45 }
 0x20e   : > { %1458 = vmatprep.subr.mxu0 %v1569_v13 }
 0x20f   : > { %1459 = vmatpush3.msra.mxu0 %v1945_v46 }
 0x210   : > { %1460 = vmatprep.subr.mxu0 %v1569_v13 }
 0x211   : > { %1461 = vmatpush3.msra.mxu0 %v1952_v47 }
 0x212   : > { %1462 = vmatprep.subr.mxu0 %v1569_v13 }
 0x213   : > { %1463 = vmatpush3.msra.mxu0 %v1959_v48 }
 0x214   : > { %1464 = vmatprep.subr.mxu0 %v1569_v13 }
 0x215   : > { %1465 = vmatpush3.msra.mxu0 %v1966_v49 }
 0x216   : > { %1466 = vmatprep.subr.mxu0 %v1569_v13 }
 0x217   : > { %1467 = vmatpush3.msra.mxu0 %v1973_v50 }
 0x218   : > { %1468 = vmatprep.subr.mxu0 %v1569_v13 }
 0x219   : > { %1469 = vmatpush3.msra.mxu0 %v1980_v51 }
 0x21a   : > { %1470 = vmatprep.subr.mxu0 %v1569_v13 }
 0x21b   : > { %1471 = vmatpush3.msra.mxu0 %v1987_v52 }
 0x21c   : > { %1472 = vmatprep.subr.mxu0 %v1569_v13 }
 0x21d   : > { %1473 = vmatpush3.msra.mxu0 %v1994_v53 }
 0x21e   : > { %1474 = vmatprep.subr.mxu0 %v1569_v13 }
 0x21f   : > { %1475 = vmatpush3.msra.mxu0 %v2001_v54 }
 0x220   : > { %1477 = vmatmul.mubr.f32.vlgmr.msra.gmra.mxu0 %v859_v19 }
 0x2e0   : > { %v926_v21 = vpop.f32.mrf.mxu0 }
 0x2e1   : > { %v930_v22 = vadd.f32 %v926_v21, %v853_v20 }
 0x2e2   : > { %v1478_v23 = vpop.f32.mrf.mxu0 }
 0x2e3   : > { %931 = vst [vmem:[#allocation2 + $0x7] sm:$0x1] %v930_v22 }
 0x2e4 PF:  {}
 0x2ea   : > { %v932_v24 = vld [vmem:[#allocation2] sm:$0xff] }
 0x2eb   : > { %v933_v25 = vrot.slane %v932_v24, 4  ;;  %948 = vst [vmem:[%s1773_s11] sm:$0xff] %v932_v24  ;;  %v940_v26 = vmul.f32 %v932_v24, %v932_v24 }
 0x2ed   : > { %v934_v27 = vadd.f32 %v933_v25, %v932_v24  ;;  %v941_v28 = vrot.slane %v940_v26, 4 }
 0x2ef   : > { %v935_v29 = vrot.slane %v934_v27, 2  ;;  %v942_v30 = vadd.f32 %v941_v28, %v940_v26 }
 0x2f1   : > { %v936_v31 = vadd.f32 %v935_v29, %v934_v27  ;;  %v943_v32 = vrot.slane %v942_v30, 2 }
 0x2f3   : > { %v937_v33 = vrot.slane %v936_v31, 1  ;;  %v944_v34 = vadd.f32 %v943_v32, %v942_v30 }
 0x2f5   : > { %v938_v35 = vadd.f32 %v937_v33, %v936_v31  ;;  %v945_v36 = vrot.slane %v944_v34, 1 }
 0x2f7   : > { %939 = vst [vmem:[%s470_s20] sm:$0x1] %v938_v35  ;;  %v946_v37 = vadd.f32 %v945_v36, %v944_v34 }
 0x2f9   : > { %947 = vst [vmem:[%s477_s14] sm:$0x1] %v946_v37 }
 0x2fa PF: > { %s19_s9 = sadd.s32 1, %s1563_s9   ;;  %s2097_s11 = sld [smem:[#allocation3_spill]] }
 0x2fb   : > { %p16_p12 = scmp.ge.s32.totalorder %s19_s9, 6   ;;  %s2098_s27 = smov %s1555_s29 }
 0x2fc   : > { %s2099_s28 = smov %s1559_s30  ;;  %s2100_s29 = smov %s2103_s10 }
 0x2fd   :  { %18 = sbr.rel (!%p16_p12) target bundleno = 3 (0x3), region = 114 }
 0x300   : > { %s2101_s30 = smov %s2097_s11 }

// kernel: double_conv.5
= control target key start
LH: loop header
LB: loop body
LE: loop exit
PB: predicated region body
PF: predicated region fallthrough
CT: control target
= control target key end

     0   :  { %s420_s12 = smov 0   ;;  %s422_s13 = smov 0   ;;  %s471_s0 = inlined_call_operand.vmem [shape: f32[1,128], index: 0, kind: input, shape index: {}]   ;;  %s472_s1 = inlined_call_operand.vmem [shape: f32[1,128], index: 1, kind: input, shape index: {}]   ;;  %s473_s2 = inlined_call_operand.vmem [shape: f32[2,16,128], index: 2, kind: input, shape index: {}]   ;;  %s474_s3 = inlined_call_operand.vmem [shape: f32[2,16,128], index: 3, kind: output, shape index: {}]  }
   0x1   :  { %s424_s14 = smov 0   ;;  %s426_s15 = smov 0  }
   0x2   :  { %s428_s16 = smov 0  }
   0x3 LB: > { %s22_s17 = sadd.s32 1, %s390_s14  ;;  %s25_s18 = sadd.s32 1, %s394_s15  ;;  %s398_s16 = sphi %s428_s16, %s13_s16   ;;  %s394_s15 = sphi %s426_s15, %s478_s15   ;;  %s390_s14 = sphi %s424_s14, %s477_s14   ;;  %s386_s13 = sphi %s422_s13, %s476_s13   ;;  %s382_s12 = sphi %s420_s12, %s475_s12  }
   0x4   : > { %p23_p0 = scmp.ge.s32.totalorder %s22_s17, 2  ;;  %p311_p1 = scmp.ge.s32.totalorder %s398_s16, 1 }
   0x5   : > { %p156_p2 = scmp.lt.s32.totalorder %s398_s16, 5 }
   0x6   : > { %s480_s17 = smov (%p23_p0, %s22_s17), 0  ;;  %s482_s18 = smov (!%p23_p0, %s25_s18), %s394_s15 }
   0x7   : > { %p157_p3 = pnand %p311_p1, %p156_p2  ;;  %p27_p4 = scmp.ge.s32.totalorder %s482_s18, 2 }
   0x8   : > { %p186_p5 = scmp.lt.s32.totalorder (!%p157_p3), %s386_s13, 1  ;;  %p188_p6 = scmp.lt.s32.totalorder (!%p157_p3), %s382_s12, 1 }
   0x9   : > { %s484_s18 = smov (%p27_p4, %s482_s18), 0  ;;  %160 = sbr.rel (%p157_p3) target bundleno = 27 (0x1b), region = 32 }
   0xe   : > { %s486_s13 = smov (!%p186_p5, %s386_s13), 1  ;;  %s488_s12 = smov (!%p188_p6, %s382_s12), 1  ;;  %v316_v0 = vld [vmem:[%s471_s0] ss:$0 sm:$0xff] }
   0xf   : > { %s312_s19 = sshll.u32 %s486_s13, 1  ;;  %v317_v2 = vld [vmem:[%s472_s1] ss:$0 sm:$0xff] }
  0x10   : > { %s191_s20 = sadd.s32 %s312_s19, %s488_s12 }
  0x11   : > { %s313_s21 = sshll.u32 %s191_s20, 3 }
  0x12   : > { %s193_s26 = scalar_lea.vmem %s473_s2, %s313_s21  ;;  %s201_s4 = scalar_lea.vmem %s474_s3, %s313_s21 }
  0x13   : > { %v202_v1 = vld [vmem:[%s193_s26] sm:$0xff] }
  0x14   : > { %v210_v3 = vmul.f32 %v316_v0, %v202_v1 }
  0x16   : > { %v218_v4 = vadd.f32 %v317_v2, %v210_v3 }
  0x18   : > { %v219_v5 = vmax.f32 %v218_v4, 0.0 }
  0x1a   : > { %220 = vst [vmem:[%s201_s4] sm:$0xff] %v219_v5 }
  0x1b PF: > { %s13_s16 = sadd.s32 1, %s398_s16   ;;  %s475_s12 = smov %s390_s14 }
  0x1c   : > { %p10_p7 = scmp.ge.s32.totalorder %s13_s16, 6   ;;  %s476_s13 = smov %s394_s15 }
  0x1d   : > { %s477_s14 = smov %s480_s17  ;;  %s478_s15 = smov %s484_s18 }
  0x1e   :  { %12 = sbr.rel (!%p10_p7) target bundleno = 3 (0x3), region = 62 }

</bundles_post_ra>
